<compile_context>
chip_gen: v5e
topology: v5e:2x2
jax: 0.10.0
libtpu: 0.0.40
codegen_flags: <defaults>
</compile_context>

<pallas_src>
import numpy as np
import jax
import jax.numpy as jnp
from jax import lax
from jax.experimental import pallas as pl
from jax.experimental.pallas import tpu as pltpu


def _ceil8(n):
    return ((n + 7) // 8) * 8


# ----------------------------------------------------------------------------
# Pallas kernel (all static dims derived from ref shapes)
# ----------------------------------------------------------------------------
def gru_network_kernel(xf_ref, of_ref, gruw_ref, headw_ref,
                       logits_ref, value_ref, hidden_ref):
    B_pad, H = hidden_ref.shape
    Kx = xf_ref.shape[1]                      # padded input_dim + ones column
    Kv = of_ref.shape[1]                      # padded obs_dim + ones column
    T = xf_ref.shape[0] // B_pad
    To = of_ref.shape[0] // B_pad
    A_pad = logits_ref.shape[1]               # lane-padded head width (128)

    # ---- carve the packed GRU weight slab (sublane-aligned static offsets) --
    wih = gruw_ref[0:Kx, :]                   # (Kx, G) incl. folded gi-bias row
    whh = gruw_ref[Kx:Kx + H, :]              # (H, G)  fused r|z|n hidden weights
    bnh = jnp.broadcast_to(
        gruw_ref[Kx + H:Kx + H + 1, :][:, 2 * H:3 * H], (B_pad, H))
    v0 = Kx + H + 8
    vwih = gruw_ref[v0:v0 + Kv, :]
    vwhh = gruw_ref[v0 + Kv:v0 + Kv + H, :]
    vbnh = jnp.broadcast_to(
        gruw_ref[v0 + Kv + H:v0 + Kv + H + 1, :][:, 2 * H:3 * H], (B_pad, H))

    # ---- carve the packed head-MLP slab (everything lane-dense, 128 wide) ---
    pw1 = headw_ref[0:H, :]                                   # (H, A_pad)
    pb1 = headw_ref[H:H + 1, :]
    pw2 = headw_ref[H + 8:H + 8 + A_pad, :]                   # (A_pad, A_pad)
    pb2 = headw_ref[H + 8 + A_pad:H + 8 + A_pad + 1, :]
    q = H + A_pad + 16
    vw1 = headw_ref[q:q + H, :]
    vb1 = headw_ref[q + H:q + H + 1, :]
    vw2 = headw_ref[q + H + 8:q + H + 8 + A_pad, :]
    vb2 = headw_ref[q + H + 8 + A_pad:q + H + 8 + A_pad + 1, :]

    # ---- hoisted input projections (gi bias folded via ones column) ---------
    # gv is issued here (independent) so the scheduler can overlap it with the
    # latency-bound policy recurrence below.
    gi = jnp.dot(xf_ref[...], wih, preferred_element_type=jnp.float32)   # (T*B, G)
    gv = jnp.dot(of_ref[...], vwih, preferred_element_type=jnp.float32)  # (To*B, G)

    # ---- policy GRU recurrence: one fused h @ W_hh matmul per step ----------
    h = jnp.zeros((B_pad, H), jnp.float32)
    h_steps = []
    for t in range(T):                        # fully unrolled, single basic block
        r0 = t * B_pad
        gi_t = gi[r0:r0 + B_pad]
        gh = jnp.dot(h, whh, preferred_element_type=jnp.float32)         # (B, G)
        r = jax.nn.sigmoid(gi_t[:, 0:H] + gh[:, 0:H])
        z = jax.nn.sigmoid(gi_t[:, H:2 * H] + gh[:, H:2 * H])
        n = jnp.tanh(gi_t[:, 2 * H:3 * H] + r * (gh[:, 2 * H:3 * H] + bnh))
        h = (1.0 - z) * n + z * h
        h_steps.append(h)
    hidden_ref[...] = h

    # ---- policy head on the full hidden history (kept in registers) ---------
    h_all = jnp.concatenate(h_steps, axis=0)                             # (T*B, H)
    hid = jnp.tanh(jnp.dot(h_all, pw1, preferred_element_type=jnp.float32) + pb1)
    logits_ref[...] = jnp.dot(hid, pw2, preferred_element_type=jnp.float32) + pb2

    # ---- value GRU (seeded with policy final hidden) -------------------------
    hv = h
    hv_steps = []
    for t in range(To):
        r0 = t * B_pad
        gv_t = gv[r0:r0 + B_pad]
        gh = jnp.dot(hv, vwhh, preferred_element_type=jnp.float32)
        r = jax.nn.sigmoid(gv_t[:, 0:H] + gh[:, 0:H])
        z = jax.nn.sigmoid(gv_t[:, H:2 * H] + gh[:, H:2 * H])
        n = jnp.tanh(gv_t[:, 2 * H:3 * H] + r * (gh[:, 2 * H:3 * H] + vbnh))
        hv = (1.0 - z) * n + z * hv
        hv_steps.append(hv)

    hv_all = jnp.concatenate(hv_steps, axis=0)                           # (To*B, H)
    v_hid = jnp.tanh(jnp.dot(hv_all, vw1, preferred_element_type=jnp.float32) + vb1)
    value_ref[...] = jnp.dot(v_hid, vw2, preferred_element_type=jnp.float32) + vb2


# ----------------------------------------------------------------------------
# Wrapper: pack params into slabs, pad batch/lanes, call the kernel
# ----------------------------------------------------------------------------
def gru_network_forward(x, obs, params):
    T, B, D = x.shape
    To, _, Do = obs.shape
    H = params["whh"].shape[0]
    A = params["pw2"].shape[1]
    HEAD = params["pw1"].shape[1]            # 64 in the reference module

    assert H % 8 == 0, "hidden_dim must be a multiple of 8 for this layout"
    B_pad = _ceil8(B)
    Kx = _ceil8(D + 1)                       # +1 ones column for folded gi bias
    Kv = _ceil8(Do + 1)
    G_pad = ((3 * H + 127) // 128) * 128     # fused-gate lane width
    A_pad = ((max(A, HEAD, 1) + 127) // 128) * 128   # head lane width (>= 128)

    # ---- activations: batch-pad, append ones column, flatten (seq, batch) ---
    xf = jnp.zeros((T, B_pad, Kx), jnp.float32)
    xf = xf.at[:, :B, :D].set(x)
    xf = xf.at[:, :, D].set(1.0)
    xf = xf.reshape(T * B_pad, Kx)

    of = jnp.zeros((To, B_pad, Kv), jnp.float32)
    of = of.at[:, :B, :Do].set(obs)
    of = of.at[:, :, Do].set(1.0)
    of = of.reshape(To * B_pad, Kv)

    def split3(w):
        return w[..., :H], w[..., H:2 * H], w[..., 2 * H:]

    # ---- one packed weight slab per GRU, concatenated (4 input DMAs total) --
    def gru_block(wih, whh, bih, bhh, K):
        d_in = wih.shape[0]
        bih_r, bih_z, bih_n = split3(bih)
        bhh_r, bhh_z, bhh_n = split3(bhh)
        gi_bias = jnp.concatenate([bih_r + bhh_r, bih_z + bhh_z, bih_n], axis=-1)
        blk = jnp.zeros((K + H + 8, G_pad), jnp.float32)
        blk = blk.at[:d_in, :3 * H].set(wih)         # input weights
        blk = blk.at[d_in, :3 * H].set(gi_bias[0])   # folded gi bias row
        blk = blk.at[K:K + H, :3 * H].set(whh)       # fused hidden weights
        blk = blk.at[K + H, 2 * H:3 * H].set(bhh_n[0])   # n-gate hidden bias
        return blk

    gru_slab = jnp.concatenate([
        gru_block(params["wih"], params["whh"], params["bih"], params["bhh"], Kx),
        gru_block(params["vwih"], params["vwhh"], params["vbih"], params["vbhh"], Kv),
    ], axis=0)

    def head_block(w1, b1, w2, b2):
        blk = jnp.zeros((H + A_pad + 16, A_pad), jnp.float32)
        blk = blk.at[:H, :HEAD].set(w1)                       # Linear(H, 64)
        blk = blk.at[H, :HEAD].set(b1[0])
        blk = blk.at[H + 8:H + 8 + HEAD, :w2.shape[1]].set(w2)  # Linear(64, out)
        blk = blk.at[H + 8 + A_pad, :b2.shape[1]].set(b2[0])
        return blk

    head_slab = jnp.concatenate([
        head_block(params["pw1"], params["pb1"], params["pw2"], params["pb2"]),
        head_block(params["vw1"], params["vb1"], params["vw2"], params["vb2"]),
    ], axis=0)

    # ---- cost estimate (helps XLA schedule neighbors around this tiny call) -
    flops = 2 * (T * B_pad * Kx * 3 * H + To * B_pad * Kv * 3 * H
                 + (T + To) * B_pad * H * 3 * H
                 + (T + To) * B_pad * H * A_pad
                 + (T + To) * B_pad * A_pad * A_pad)
    transcendentals = (T + To) * B_pad * (3 * H + A_pad)
    bytes_accessed = 4 * (xf.size + of.size + gru_slab.size + head_slab.size
                          + (T + To) * B_pad * A_pad + B_pad * H)

    vmem = pl.BlockSpec(memory_space=pltpu.MemorySpace.VMEM)
    logits_p, value_p, hidden_p = pl.pallas_call(
        gru_network_kernel,
        out_shape=(
            jax.ShapeDtypeStruct((T * B_pad, A_pad), jnp.float32),
            jax.ShapeDtypeStruct((To * B_pad, A_pad), jnp.float32),
            jax.ShapeDtypeStruct((B_pad, H), jnp.float32),
        ),
        in_specs=[vmem, vmem, vmem, vmem],
        out_specs=(vmem, vmem, vmem),
        cost_estimate=pl.CostEstimate(flops=flops,
                                      transcendentals=transcendentals,
                                      bytes_accessed=bytes_accessed),
    )(xf, of, gru_slab, head_slab)

    # Slice padding back off (XLA-side, cheap).
    logits = logits_p.reshape(T, B_pad, A_pad)[:, :B, :A]
    value = value_p.reshape(To, B_pad, A_pad)[:, :B, :1]
    hidden = hidden_p[:B][None, :, :]        # PyTorch leading num_layers=1 axis
    return logits, value, hidden


# ----------------------------------------------------------------------------
# Pure-JAX reference (for correctness check)
# ----------------------------------------------------------------------------
def ref_forward(x, obs, p):
    H = p["whh"].shape[0]

    def cell(h, x_t, wih, whh, bih, bhh):
        gi = x_t @ wih + bih
        gh = h @ whh + bhh
        r = jax.nn.sigmoid(gi[:, :H] + gh[:, :H])
        z = jax.nn.sigmoid(gi[:, H:2 * H] + gh[:, H:2 * H])
        n = jnp.tanh(gi[:, 2 * H:] + r * gh[:, 2 * H:])
        return (1.0 - z) * n + z * h

    B = x.shape[1]
    h = jnp.zeros((B, H), jnp.float32)

    def scan1(h, x_t):
        h = cell(h, x_t, p["wih"], p["whh"], p["bih"], p["bhh"])
        return h, h
    h_final, outs = lax.scan(scan1, h, x)
    logits = jnp.tanh(outs @ p["pw1"] + p["pb1"]) @ p["pw2"] + p["pb2"]

    def scan2(h, o_t):
        h = cell(h, o_t, p["vwih"], p["vwhh"], p["vbih"], p["vbhh"])
        return h, h
    _, vouts = lax.scan(scan2, h_final, obs)
    value = jnp.tanh(vouts @ p["vw1"] + p["vb1"]) @ p["vw2"] + p["vb2"]
    return logits, value, h_final[None]


# ----------------------------------------------------------------------------
# Deterministic parameter construction (synthetic; mirrors nn.GRU / nn.Linear
# shapes; weights stored pre-transposed so the kernel does x @ W).
# ----------------------------------------------------------------------------
def make_params(key, input_dim, hidden_dim, output_dim, obs_dim):
    ks = jax.random.split(key, 16)
    s = 1.0 / np.sqrt(hidden_dim)
    u = lambda k, shape: jax.random.uniform(k, shape, jnp.float32, -s, s)
    return {
        "wih": u(ks[0], (input_dim, 3 * hidden_dim)),
        "whh": u(ks[1], (hidden_dim, 3 * hidden_dim)),
        "bih": u(ks[2], (1, 3 * hidden_dim)),
        "bhh": u(ks[3], (1, 3 * hidden_dim)),
        "pw1": u(ks[4], (hidden_dim, 64)),
        "pb1": u(ks[5], (1, 64)),
        "pw2": u(ks[6], (64, output_dim)),
        "pb2": u(ks[7], (1, output_dim)),
        "vwih": u(ks[8], (obs_dim, 3 * hidden_dim)),
        "vwhh": u(ks[9], (hidden_dim, 3 * hidden_dim)),
        "vbih": u(ks[10], (1, 3 * hidden_dim)),
        "vbhh": u(ks[11], (1, 3 * hidden_dim)),
        "vw1": u(ks[12], (hidden_dim, 64)),
        "vb1": u(ks[13], (1, 64)),
        "vw2": u(ks[14], (64, 1)),
        "vb2": u(ks[15], (1, 1)),
    }


if __name__ == "__main__":
    T, B = 8, 4
    input_dim, hidden_dim, output_dim, obs_dim = 16, 32, 6, 12

    key = jax.random.PRNGKey(0)
    kx, kobs, kp = jax.random.split(key, 3)
    x = jax.random.normal(kx, (T, B, input_dim), jnp.float32)
    obs = jax.random.normal(kobs, (T, B, obs_dim), jnp.float32)
    params = make_params(kp, input_dim, hidden_dim, output_dim, obs_dim)

    logits, value, hidden = jax.block_until_ready(
        gru_network_forward(x, obs, params))

    ref_logits, ref_value, ref_hidden = ref_forward(x, obs, params)
    assert logits.shape == (T, B, output_dim)
    assert value.shape == (T, B, 1)
    assert hidden.shape == (1, B, hidden_dim)
    np.testing.assert_allclose(np.asarray(logits), np.asarray(ref_logits),
                               rtol=1e-4, atol=1e-4)
    np.testing.assert_allclose(np.asarray(value), np.asarray(ref_value),
                               rtol=1e-4, atol=1e-4)
    np.testing.assert_allclose(np.asarray(hidden), np.asarray(ref_hidden),
                               rtol=1e-4, atol=1e-4)

    print("KERNEL_OK")
</pallas_src>

<mosaic_0001>
module attributes {stable_mosaic.version = 11 : i64} {
  func.func @gru_network_kernel(%arg0: memref<64x24xf32, #tpu.memory_space<vmem>>, %arg1: memref<64x16xf32, #tpu.memory_space<vmem>>, %arg2: memref<120x128xf32, #tpu.memory_space<vmem>>, %arg3: memref<352x128xf32, #tpu.memory_space<vmem>>, %arg4: memref<64x128xf32, #tpu.memory_space<vmem>>, %arg5: memref<64x128xf32, #tpu.memory_space<vmem>>, %arg6: memref<8x32xf32, #tpu.memory_space<vmem>>) attributes {dimension_semantics = [], scalar_prefetch = 0 : i64, scratch_operands = 0 : i64, tpu.core_type = #tpu.core_type<tc>} {
    %c0 = arith.constant 0 : index
    %c0_0 = arith.constant 0 : index
    %0 = vector.load %arg2[%c0, %c0_0] : memref<120x128xf32, #tpu.memory_space<vmem>>, vector<24x128xf32>
    %c24 = arith.constant 24 : index
    %c0_1 = arith.constant 0 : index
    %1 = vector.load %arg2[%c24, %c0_1] : memref<120x128xf32, #tpu.memory_space<vmem>>, vector<32x128xf32>
    %c56 = arith.constant 56 : index
    %c0_2 = arith.constant 0 : index
    %2 = vector.load %arg2[%c56, %c0_2] : memref<120x128xf32, #tpu.memory_space<vmem>>, vector<1x128xf32>
    %3 = vector.extract_strided_slice %2 {offsets = [0, 64], sizes = [1, 32], strides = [1, 1]} : vector<1x128xf32> to vector<1x32xf32>
    %4 = vector.shape_cast %3 : vector<1x32xf32> to vector<1x32xf32>
    %5 = vector.broadcast %4 : vector<1x32xf32> to vector<8x32xf32>
    %c64 = arith.constant 64 : index
    %c0_3 = arith.constant 0 : index
    %6 = vector.load %arg2[%c64, %c0_3] : memref<120x128xf32, #tpu.memory_space<vmem>>, vector<16x128xf32>
    %c80 = arith.constant 80 : index
    %c0_4 = arith.constant 0 : index
    %7 = vector.load %arg2[%c80, %c0_4] : memref<120x128xf32, #tpu.memory_space<vmem>>, vector<32x128xf32>
    %c112 = arith.constant 112 : index
    %c0_5 = arith.constant 0 : index
    %8 = vector.load %arg2[%c112, %c0_5] : memref<120x128xf32, #tpu.memory_space<vmem>>, vector<1x128xf32>
    %9 = vector.extract_strided_slice %8 {offsets = [0, 64], sizes = [1, 32], strides = [1, 1]} : vector<1x128xf32> to vector<1x32xf32>
    %10 = vector.shape_cast %9 : vector<1x32xf32> to vector<1x32xf32>
    %11 = vector.broadcast %10 : vector<1x32xf32> to vector<8x32xf32>
    %c0_6 = arith.constant 0 : index
    %c0_7 = arith.constant 0 : index
    %12 = vector.load %arg3[%c0_6, %c0_7] : memref<352x128xf32, #tpu.memory_space<vmem>>, vector<32x128xf32>
    %c32 = arith.constant 32 : index
    %c0_8 = arith.constant 0 : index
    %13 = vector.load %arg3[%c32, %c0_8] : memref<352x128xf32, #tpu.memory_space<vmem>>, vector<1x128xf32>
    %c40 = arith.constant 40 : index
    %c0_9 = arith.constant 0 : index
    %14 = vector.load %arg3[%c40, %c0_9] : memref<352x128xf32, #tpu.memory_space<vmem>>, vector<128x128xf32>
    %c168 = arith.constant 168 : index
    %c0_10 = arith.constant 0 : index
    %15 = vector.load %arg3[%c168, %c0_10] : memref<352x128xf32, #tpu.memory_space<vmem>>, vector<1x128xf32>
    %c176 = arith.constant 176 : index
    %c0_11 = arith.constant 0 : index
    %16 = vector.load %arg3[%c176, %c0_11] : memref<352x128xf32, #tpu.memory_space<vmem>>, vector<32x128xf32>
    %c208 = arith.constant 208 : index
    %c0_12 = arith.constant 0 : index
    %17 = vector.load %arg3[%c208, %c0_12] : memref<352x128xf32, #tpu.memory_space<vmem>>, vector<1x128xf32>
    %c216 = arith.constant 216 : index
    %c0_13 = arith.constant 0 : index
    %18 = vector.load %arg3[%c216, %c0_13] : memref<352x128xf32, #tpu.memory_space<vmem>>, vector<128x128xf32>
    %c344 = arith.constant 344 : index
    %c0_14 = arith.constant 0 : index
    %19 = vector.load %arg3[%c344, %c0_14] : memref<352x128xf32, #tpu.memory_space<vmem>>, vector<1x128xf32>
    %c0_15 = arith.constant 0 : index
    %c0_16 = arith.constant 0 : index
    %20 = vector.load %arg0[%c0_15, %c0_16] : memref<64x24xf32, #tpu.memory_space<vmem>>, vector<64x24xf32>
    %cst = arith.constant dense<0.000000e+00> : vector<64x128xf32>
    %21 = tpu.matmul %20, %0, %cst {dimension_numbers = #tpu.dot_dimension_numbers<[1], [0], [0], [1], [0, 0, 1, 1], [], []>} : vector<64x24xf32>, vector<24x128xf32>, vector<64x128xf32> -> vector<64x128xf32>
    %c0_17 = arith.constant 0 : index
    %c0_18 = arith.constant 0 : index
    %22 = vector.load %arg1[%c0_17, %c0_18] : memref<64x16xf32, #tpu.memory_space<vmem>>, vector<64x16xf32>
    %cst_19 = arith.constant dense<0.000000e+00> : vector<64x128xf32>
    %23 = tpu.matmul %22, %6, %cst_19 {dimension_numbers = #tpu.dot_dimension_numbers<[1], [0], [0], [1], [0, 0, 1, 1], [], []>} : vector<64x16xf32>, vector<16x128xf32>, vector<64x128xf32> -> vector<64x128xf32>
    %cst_20 = arith.constant 0.000000e+00 : f32
    %24 = vector.broadcast %cst_20 : f32 to vector<8x32xf32>
    %25 = vector.extract_strided_slice %21 {offsets = [0, 0], sizes = [8, 128], strides = [1, 1]} : vector<64x128xf32> to vector<8x128xf32>
    %cst_21 = arith.constant dense<0.000000e+00> : vector<8x128xf32>
    %26 = tpu.matmul %24, %1, %cst_21 {dimension_numbers = #tpu.dot_dimension_numbers<[1], [0], [0], [1], [0, 0, 1, 1], [], []>} : vector<8x32xf32>, vector<32x128xf32>, vector<8x128xf32> -> vector<8x128xf32>
    %27 = vector.extract_strided_slice %25 {offsets = [0, 0], sizes = [8, 32], strides = [1, 1]} : vector<8x128xf32> to vector<8x32xf32>
    %28 = vector.extract_strided_slice %26 {offsets = [0, 0], sizes = [8, 32], strides = [1, 1]} : vector<8x128xf32> to vector<8x32xf32>
    %29 = arith.addf %27, %28 : vector<8x32xf32>
    %30 = arith.negf %29 : vector<8x32xf32>
    %31 = math.exp %30 : vector<8x32xf32>
    %cst_22 = arith.constant 1.000000e+00 : f32
    %32 = vector.broadcast %cst_22 : f32 to vector<8x32xf32>
    %33 = arith.addf %32, %31 : vector<8x32xf32>
    %34 = arith.divf %32, %33 : vector<8x32xf32>
    %35 = vector.extract_strided_slice %25 {offsets = [0, 32], sizes = [8, 32], strides = [1, 1]} : vector<8x128xf32> to vector<8x32xf32>
    %36 = vector.extract_strided_slice %26 {offsets = [0, 32], sizes = [8, 32], strides = [1, 1]} : vector<8x128xf32> to vector<8x32xf32>
    %37 = arith.addf %35, %36 : vector<8x32xf32>
    %38 = arith.negf %37 : vector<8x32xf32>
    %39 = math.exp %38 : vector<8x32xf32>
    %cst_23 = arith.constant 1.000000e+00 : f32
    %40 = vector.broadcast %cst_23 : f32 to vector<8x32xf32>
    %41 = arith.addf %40, %39 : vector<8x32xf32>
    %42 = arith.divf %40, %41 : vector<8x32xf32>
    %43 = vector.extract_strided_slice %25 {offsets = [0, 64], sizes = [8, 32], strides = [1, 1]} : vector<8x128xf32> to vector<8x32xf32>
    %44 = vector.extract_strided_slice %26 {offsets = [0, 64], sizes = [8, 32], strides = [1, 1]} : vector<8x128xf32> to vector<8x32xf32>
    %45 = arith.addf %44, %5 : vector<8x32xf32>
    %46 = arith.mulf %34, %45 : vector<8x32xf32>
    %47 = arith.addf %43, %46 : vector<8x32xf32>
    %48 = math.tanh %47 : vector<8x32xf32>
    %cst_24 = arith.constant 1.000000e+00 : f32
    %49 = vector.broadcast %cst_24 : f32 to vector<8x32xf32>
    %50 = arith.subf %49, %42 : vector<8x32xf32>
    %51 = arith.mulf %50, %48 : vector<8x32xf32>
    %52 = arith.mulf %42, %24 : vector<8x32xf32>
    %53 = arith.addf %51, %52 : vector<8x32xf32>
    %54 = vector.extract_strided_slice %21 {offsets = [8, 0], sizes = [8, 128], strides = [1, 1]} : vector<64x128xf32> to vector<8x128xf32>
    %cst_25 = arith.constant dense<0.000000e+00> : vector<8x128xf32>
    %55 = tpu.matmul %53, %1, %cst_25 {dimension_numbers = #tpu.dot_dimension_numbers<[1], [0], [0], [1], [0, 0, 1, 1], [], []>} : vector<8x32xf32>, vector<32x128xf32>, vector<8x128xf32> -> vector<8x128xf32>
    %56 = vector.extract_strided_slice %54 {offsets = [0, 0], sizes = [8, 32], strides = [1, 1]} : vector<8x128xf32> to vector<8x32xf32>
    %57 = vector.extract_strided_slice %55 {offsets = [0, 0], sizes = [8, 32], strides = [1, 1]} : vector<8x128xf32> to vector<8x32xf32>
    %58 = arith.addf %56, %57 : vector<8x32xf32>
    %59 = arith.negf %58 : vector<8x32xf32>
    %60 = math.exp %59 : vector<8x32xf32>
    %cst_26 = arith.constant 1.000000e+00 : f32
    %61 = vector.broadcast %cst_26 : f32 to vector<8x32xf32>
    %62 = arith.addf %61, %60 : vector<8x32xf32>
    %63 = arith.divf %61, %62 : vector<8x32xf32>
    %64 = vector.extract_strided_slice %54 {offsets = [0, 32], sizes = [8, 32], strides = [1, 1]} : vector<8x128xf32> to vector<8x32xf32>
    %65 = vector.extract_strided_slice %55 {offsets = [0, 32], sizes = [8, 32], strides = [1, 1]} : vector<8x128xf32> to vector<8x32xf32>
    %66 = arith.addf %64, %65 : vector<8x32xf32>
    %67 = arith.negf %66 : vector<8x32xf32>
    %68 = math.exp %67 : vector<8x32xf32>
    %cst_27 = arith.constant 1.000000e+00 : f32
    %69 = vector.broadcast %cst_27 : f32 to vector<8x32xf32>
    %70 = arith.addf %69, %68 : vector<8x32xf32>
    %71 = arith.divf %69, %70 : vector<8x32xf32>
    %72 = vector.extract_strided_slice %54 {offsets = [0, 64], sizes = [8, 32], strides = [1, 1]} : vector<8x128xf32> to vector<8x32xf32>
    %73 = vector.extract_strided_slice %55 {offsets = [0, 64], sizes = [8, 32], strides = [1, 1]} : vector<8x128xf32> to vector<8x32xf32>
    %74 = arith.addf %73, %5 : vector<8x32xf32>
    %75 = arith.mulf %63, %74 : vector<8x32xf32>
    %76 = arith.addf %72, %75 : vector<8x32xf32>
    %77 = math.tanh %76 : vector<8x32xf32>
    %cst_28 = arith.constant 1.000000e+00 : f32
    %78 = vector.broadcast %cst_28 : f32 to vector<8x32xf32>
    %79 = arith.subf %78, %71 : vector<8x32xf32>
    %80 = arith.mulf %79, %77 : vector<8x32xf32>
    %81 = arith.mulf %71, %53 : vector<8x32xf32>
    %82 = arith.addf %80, %81 : vector<8x32xf32>
    %83 = vector.extract_strided_slice %21 {offsets = [16, 0], sizes = [8, 128], strides = [1, 1]} : vector<64x128xf32> to vector<8x128xf32>
    %cst_29 = arith.constant dense<0.000000e+00> : vector<8x128xf32>
    %84 = tpu.matmul %82, %1, %cst_29 {dimension_numbers = #tpu.dot_dimension_numbers<[1], [0], [0], [1], [0, 0, 1, 1], [], []>} : vector<8x32xf32>, vector<32x128xf32>, vector<8x128xf32> -> vector<8x128xf32>
    %85 = vector.extract_strided_slice %83 {offsets = [0, 0], sizes = [8, 32], strides = [1, 1]} : vector<8x128xf32> to vector<8x32xf32>
    %86 = vector.extract_strided_slice %84 {offsets = [0, 0], sizes = [8, 32], strides = [1, 1]} : vector<8x128xf32> to vector<8x32xf32>
    %87 = arith.addf %85, %86 : vector<8x32xf32>
    %88 = arith.negf %87 : vector<8x32xf32>
    %89 = math.exp %88 : vector<8x32xf32>
    %cst_30 = arith.constant 1.000000e+00 : f32
    %90 = vector.broadcast %cst_30 : f32 to vector<8x32xf32>
    %91 = arith.addf %90, %89 : vector<8x32xf32>
    %92 = arith.divf %90, %91 : vector<8x32xf32>
    %93 = vector.extract_strided_slice %83 {offsets = [0, 32], sizes = [8, 32], strides = [1, 1]} : vector<8x128xf32> to vector<8x32xf32>
    %94 = vector.extract_strided_slice %84 {offsets = [0, 32], sizes = [8, 32], strides = [1, 1]} : vector<8x128xf32> to vector<8x32xf32>
    %95 = arith.addf %93, %94 : vector<8x32xf32>
    %96 = arith.negf %95 : vector<8x32xf32>
    %97 = math.exp %96 : vector<8x32xf32>
    %cst_31 = arith.constant 1.000000e+00 : f32
    %98 = vector.broadcast %cst_31 : f32 to vector<8x32xf32>
    %99 = arith.addf %98, %97 : vector<8x32xf32>
    %100 = arith.divf %98, %99 : vector<8x32xf32>
    %101 = vector.extract_strided_slice %83 {offsets = [0, 64], sizes = [8, 32], strides = [1, 1]} : vector<8x128xf32> to vector<8x32xf32>
    %102 = vector.extract_strided_slice %84 {offsets = [0, 64], sizes = [8, 32], strides = [1, 1]} : vector<8x128xf32> to vector<8x32xf32>
    %103 = arith.addf %102, %5 : vector<8x32xf32>
    %104 = arith.mulf %92, %103 : vector<8x32xf32>
    %105 = arith.addf %101, %104 : vector<8x32xf32>
    %106 = math.tanh %105 : vector<8x32xf32>
    %cst_32 = arith.constant 1.000000e+00 : f32
    %107 = vector.broadcast %cst_32 : f32 to vector<8x32xf32>
    %108 = arith.subf %107, %100 : vector<8x32xf32>
    %109 = arith.mulf %108, %106 : vector<8x32xf32>
    %110 = arith.mulf %100, %82 : vector<8x32xf32>
    %111 = arith.addf %109, %110 : vector<8x32xf32>
    %112 = vector.extract_strided_slice %21 {offsets = [24, 0], sizes = [8, 128], strides = [1, 1]} : vector<64x128xf32> to vector<8x128xf32>
    %cst_33 = arith.constant dense<0.000000e+00> : vector<8x128xf32>
    %113 = tpu.matmul %111, %1, %cst_33 {dimension_numbers = #tpu.dot_dimension_numbers<[1], [0], [0], [1], [0, 0, 1, 1], [], []>} : vector<8x32xf32>, vector<32x128xf32>, vector<8x128xf32> -> vector<8x128xf32>
    %114 = vector.extract_strided_slice %112 {offsets = [0, 0], sizes = [8, 32], strides = [1, 1]} : vector<8x128xf32> to vector<8x32xf32>
    %115 = vector.extract_strided_slice %113 {offsets = [0, 0], sizes = [8, 32], strides = [1, 1]} : vector<8x128xf32> to vector<8x32xf32>
    %116 = arith.addf %114, %115 : vector<8x32xf32>
    %117 = arith.negf %116 : vector<8x32xf32>
    %118 = math.exp %117 : vector<8x32xf32>
    %cst_34 = arith.constant 1.000000e+00 : f32
    %119 = vector.broadcast %cst_34 : f32 to vector<8x32xf32>
    %120 = arith.addf %119, %118 : vector<8x32xf32>
    %121 = arith.divf %119, %120 : vector<8x32xf32>
    %122 = vector.extract_strided_slice %112 {offsets = [0, 32], sizes = [8, 32], strides = [1, 1]} : vector<8x128xf32> to vector<8x32xf32>
    %123 = vector.extract_strided_slice %113 {offsets = [0, 32], sizes = [8, 32], strides = [1, 1]} : vector<8x128xf32> to vector<8x32xf32>
    %124 = arith.addf %122, %123 : vector<8x32xf32>
    %125 = arith.negf %124 : vector<8x32xf32>
    %126 = math.exp %125 : vector<8x32xf32>
    %cst_35 = arith.constant 1.000000e+00 : f32
    %127 = vector.broadcast %cst_35 : f32 to vector<8x32xf32>
    %128 = arith.addf %127, %126 : vector<8x32xf32>
    %129 = arith.divf %127, %128 : vector<8x32xf32>
    %130 = vector.extract_strided_slice %112 {offsets = [0, 64], sizes = [8, 32], strides = [1, 1]} : vector<8x128xf32> to vector<8x32xf32>
    %131 = vector.extract_strided_slice %113 {offsets = [0, 64], sizes = [8, 32], strides = [1, 1]} : vector<8x128xf32> to vector<8x32xf32>
    %132 = arith.addf %131, %5 : vector<8x32xf32>
    %133 = arith.mulf %121, %132 : vector<8x32xf32>
    %134 = arith.addf %130, %133 : vector<8x32xf32>
    %135 = math.tanh %134 : vector<8x32xf32>
    %cst_36 = arith.constant 1.000000e+00 : f32
    %136 = vector.broadcast %cst_36 : f32 to vector<8x32xf32>
    %137 = arith.subf %136, %129 : vector<8x32xf32>
    %138 = arith.mulf %137, %135 : vector<8x32xf32>
    %139 = arith.mulf %129, %111 : vector<8x32xf32>
    %140 = arith.addf %138, %139 : vector<8x32xf32>
    %141 = vector.extract_strided_slice %21 {offsets = [32, 0], sizes = [8, 128], strides = [1, 1]} : vector<64x128xf32> to vector<8x128xf32>
    %cst_37 = arith.constant dense<0.000000e+00> : vector<8x128xf32>
    %142 = tpu.matmul %140, %1, %cst_37 {dimension_numbers = #tpu.dot_dimension_numbers<[1], [0], [0], [1], [0, 0, 1, 1], [], []>} : vector<8x32xf32>, vector<32x128xf32>, vector<8x128xf32> -> vector<8x128xf32>
    %143 = vector.extract_strided_slice %141 {offsets = [0, 0], sizes = [8, 32], strides = [1, 1]} : vector<8x128xf32> to vector<8x32xf32>
    %144 = vector.extract_strided_slice %142 {offsets = [0, 0], sizes = [8, 32], strides = [1, 1]} : vector<8x128xf32> to vector<8x32xf32>
    %145 = arith.addf %143, %144 : vector<8x32xf32>
    %146 = arith.negf %145 : vector<8x32xf32>
    %147 = math.exp %146 : vector<8x32xf32>
    %cst_38 = arith.constant 1.000000e+00 : f32
    %148 = vector.broadcast %cst_38 : f32 to vector<8x32xf32>
    %149 = arith.addf %148, %147 : vector<8x32xf32>
    %150 = arith.divf %148, %149 : vector<8x32xf32>
    %151 = vector.extract_strided_slice %141 {offsets = [0, 32], sizes = [8, 32], strides = [1, 1]} : vector<8x128xf32> to vector<8x32xf32>
    %152 = vector.extract_strided_slice %142 {offsets = [0, 32], sizes = [8, 32], strides = [1, 1]} : vector<8x128xf32> to vector<8x32xf32>
    %153 = arith.addf %151, %152 : vector<8x32xf32>
    %154 = arith.negf %153 : vector<8x32xf32>
    %155 = math.exp %154 : vector<8x32xf32>
    %cst_39 = arith.constant 1.000000e+00 : f32
    %156 = vector.broadcast %cst_39 : f32 to vector<8x32xf32>
    %157 = arith.addf %156, %155 : vector<8x32xf32>
    %158 = arith.divf %156, %157 : vector<8x32xf32>
    %159 = vector.extract_strided_slice %141 {offsets = [0, 64], sizes = [8, 32], strides = [1, 1]} : vector<8x128xf32> to vector<8x32xf32>
    %160 = vector.extract_strided_slice %142 {offsets = [0, 64], sizes = [8, 32], strides = [1, 1]} : vector<8x128xf32> to vector<8x32xf32>
    %161 = arith.addf %160, %5 : vector<8x32xf32>
    %162 = arith.mulf %150, %161 : vector<8x32xf32>
    %163 = arith.addf %159, %162 : vector<8x32xf32>
    %164 = math.tanh %163 : vector<8x32xf32>
    %cst_40 = arith.constant 1.000000e+00 : f32
    %165 = vector.broadcast %cst_40 : f32 to vector<8x32xf32>
    %166 = arith.subf %165, %158 : vector<8x32xf32>
    %167 = arith.mulf %166, %164 : vector<8x32xf32>
    %168 = arith.mulf %158, %140 : vector<8x32xf32>
    %169 = arith.addf %167, %168 : vector<8x32xf32>
    %170 = vector.extract_strided_slice %21 {offsets = [40, 0], sizes = [8, 128], strides = [1, 1]} : vector<64x128xf32> to vector<8x128xf32>
    %cst_41 = arith.constant dense<0.000000e+00> : vector<8x128xf32>
    %171 = tpu.matmul %169, %1, %cst_41 {dimension_numbers = #tpu.dot_dimension_numbers<[1], [0], [0], [1], [0, 0, 1, 1], [], []>} : vector<8x32xf32>, vector<32x128xf32>, vector<8x128xf32> -> vector<8x128xf32>
    %172 = vector.extract_strided_slice %170 {offsets = [0, 0], sizes = [8, 32], strides = [1, 1]} : vector<8x128xf32> to vector<8x32xf32>
    %173 = vector.extract_strided_slice %171 {offsets = [0, 0], sizes = [8, 32], strides = [1, 1]} : vector<8x128xf32> to vector<8x32xf32>
    %174 = arith.addf %172, %173 : vector<8x32xf32>
    %175 = arith.negf %174 : vector<8x32xf32>
    %176 = math.exp %175 : vector<8x32xf32>
    %cst_42 = arith.constant 1.000000e+00 : f32
    %177 = vector.broadcast %cst_42 : f32 to vector<8x32xf32>
    %178 = arith.addf %177, %176 : vector<8x32xf32>
    %179 = arith.divf %177, %178 : vector<8x32xf32>
    %180 = vector.extract_strided_slice %170 {offsets = [0, 32], sizes = [8, 32], strides = [1, 1]} : vector<8x128xf32> to vector<8x32xf32>
    %181 = vector.extract_strided_slice %171 {offsets = [0, 32], sizes = [8, 32], strides = [1, 1]} : vector<8x128xf32> to vector<8x32xf32>
    %182 = arith.addf %180, %181 : vector<8x32xf32>
    %183 = arith.negf %182 : vector<8x32xf32>
    %184 = math.exp %183 : vector<8x32xf32>
    %cst_43 = arith.constant 1.000000e+00 : f32
    %185 = vector.broadcast %cst_43 : f32 to vector<8x32xf32>
    %186 = arith.addf %185, %184 : vector<8x32xf32>
    %187 = arith.divf %185, %186 : vector<8x32xf32>
    %188 = vector.extract_strided_slice %170 {offsets = [0, 64], sizes = [8, 32], strides = [1, 1]} : vector<8x128xf32> to vector<8x32xf32>
    %189 = vector.extract_strided_slice %171 {offsets = [0, 64], sizes = [8, 32], strides = [1, 1]} : vector<8x128xf32> to vector<8x32xf32>
    %190 = arith.addf %189, %5 : vector<8x32xf32>
    %191 = arith.mulf %179, %190 : vector<8x32xf32>
    %192 = arith.addf %188, %191 : vector<8x32xf32>
    %193 = math.tanh %192 : vector<8x32xf32>
    %cst_44 = arith.constant 1.000000e+00 : f32
    %194 = vector.broadcast %cst_44 : f32 to vector<8x32xf32>
    %195 = arith.subf %194, %187 : vector<8x32xf32>
    %196 = arith.mulf %195, %193 : vector<8x32xf32>
    %197 = arith.mulf %187, %169 : vector<8x32xf32>
    %198 = arith.addf %196, %197 : vector<8x32xf32>
    %199 = vector.extract_strided_slice %21 {offsets = [48, 0], sizes = [8, 128], strides = [1, 1]} : vector<64x128xf32> to vector<8x128xf32>
    %cst_45 = arith.constant dense<0.000000e+00> : vector<8x128xf32>
    %200 = tpu.matmul %198, %1, %cst_45 {dimension_numbers = #tpu.dot_dimension_numbers<[1], [0], [0], [1], [0, 0, 1, 1], [], []>} : vector<8x32xf32>, vector<32x128xf32>, vector<8x128xf32> -> vector<8x128xf32>
    %201 = vector.extract_strided_slice %199 {offsets = [0, 0], sizes = [8, 32], strides = [1, 1]} : vector<8x128xf32> to vector<8x32xf32>
    %202 = vector.extract_strided_slice %200 {offsets = [0, 0], sizes = [8, 32], strides = [1, 1]} : vector<8x128xf32> to vector<8x32xf32>
    %203 = arith.addf %201, %202 : vector<8x32xf32>
    %204 = arith.negf %203 : vector<8x32xf32>
    %205 = math.exp %204 : vector<8x32xf32>
    %cst_46 = arith.constant 1.000000e+00 : f32
    %206 = vector.broadcast %cst_46 : f32 to vector<8x32xf32>
    %207 = arith.addf %206, %205 : vector<8x32xf32>
    %208 = arith.divf %206, %207 : vector<8x32xf32>
    %209 = vector.extract_strided_slice %199 {offsets = [0, 32], sizes = [8, 32], strides = [1, 1]} : vector<8x128xf32> to vector<8x32xf32>
    %210 = vector.extract_strided_slice %200 {offsets = [0, 32], sizes = [8, 32], strides = [1, 1]} : vector<8x128xf32> to vector<8x32xf32>
    %211 = arith.addf %209, %210 : vector<8x32xf32>
    %212 = arith.negf %211 : vector<8x32xf32>
    %213 = math.exp %212 : vector<8x32xf32>
    %cst_47 = arith.constant 1.000000e+00 : f32
    %214 = vector.broadcast %cst_47 : f32 to vector<8x32xf32>
    %215 = arith.addf %214, %213 : vector<8x32xf32>
    %216 = arith.divf %214, %215 : vector<8x32xf32>
    %217 = vector.extract_strided_slice %199 {offsets = [0, 64], sizes = [8, 32], strides = [1, 1]} : vector<8x128xf32> to vector<8x32xf32>
    %218 = vector.extract_strided_slice %200 {offsets = [0, 64], sizes = [8, 32], strides = [1, 1]} : vector<8x128xf32> to vector<8x32xf32>
    %219 = arith.addf %218, %5 : vector<8x32xf32>
    %220 = arith.mulf %208, %219 : vector<8x32xf32>
    %221 = arith.addf %217, %220 : vector<8x32xf32>
    %222 = math.tanh %221 : vector<8x32xf32>
    %cst_48 = arith.constant 1.000000e+00 : f32
    %223 = vector.broadcast %cst_48 : f32 to vector<8x32xf32>
    %224 = arith.subf %223, %216 : vector<8x32xf32>
    %225 = arith.mulf %224, %222 : vector<8x32xf32>
    %226 = arith.mulf %216, %198 : vector<8x32xf32>
    %227 = arith.addf %225, %226 : vector<8x32xf32>
    %228 = vector.extract_strided_slice %21 {offsets = [56, 0], sizes = [8, 128], strides = [1, 1]} : vector<64x128xf32> to vector<8x128xf32>
    %cst_49 = arith.constant dense<0.000000e+00> : vector<8x128xf32>
    %229 = tpu.matmul %227, %1, %cst_49 {dimension_numbers = #tpu.dot_dimension_numbers<[1], [0], [0], [1], [0, 0, 1, 1], [], []>} : vector<8x32xf32>, vector<32x128xf32>, vector<8x128xf32> -> vector<8x128xf32>
    %230 = vector.extract_strided_slice %228 {offsets = [0, 0], sizes = [8, 32], strides = [1, 1]} : vector<8x128xf32> to vector<8x32xf32>
    %231 = vector.extract_strided_slice %229 {offsets = [0, 0], sizes = [8, 32], strides = [1, 1]} : vector<8x128xf32> to vector<8x32xf32>
    %232 = arith.addf %230, %231 : vector<8x32xf32>
    %233 = arith.negf %232 : vector<8x32xf32>
    %234 = math.exp %233 : vector<8x32xf32>
    %cst_50 = arith.constant 1.000000e+00 : f32
    %235 = vector.broadcast %cst_50 : f32 to vector<8x32xf32>
    %236 = arith.addf %235, %234 : vector<8x32xf32>
    %237 = arith.divf %235, %236 : vector<8x32xf32>
    %238 = vector.extract_strided_slice %228 {offsets = [0, 32], sizes = [8, 32], strides = [1, 1]} : vector<8x128xf32> to vector<8x32xf32>
    %239 = vector.extract_strided_slice %229 {offsets = [0, 32], sizes = [8, 32], strides = [1, 1]} : vector<8x128xf32> to vector<8x32xf32>
    %240 = arith.addf %238, %239 : vector<8x32xf32>
    %241 = arith.negf %240 : vector<8x32xf32>
    %242 = math.exp %241 : vector<8x32xf32>
    %cst_51 = arith.constant 1.000000e+00 : f32
    %243 = vector.broadcast %cst_51 : f32 to vector<8x32xf32>
    %244 = arith.addf %243, %242 : vector<8x32xf32>
    %245 = arith.divf %243, %244 : vector<8x32xf32>
    %246 = vector.extract_strided_slice %228 {offsets = [0, 64], sizes = [8, 32], strides = [1, 1]} : vector<8x128xf32> to vector<8x32xf32>
    %247 = vector.extract_strided_slice %229 {offsets = [0, 64], sizes = [8, 32], strides = [1, 1]} : vector<8x128xf32> to vector<8x32xf32>
    %248 = arith.addf %247, %5 : vector<8x32xf32>
    %249 = arith.mulf %237, %248 : vector<8x32xf32>
    %250 = arith.addf %246, %249 : vector<8x32xf32>
    %251 = math.tanh %250 : vector<8x32xf32>
    %cst_52 = arith.constant 1.000000e+00 : f32
    %252 = vector.broadcast %cst_52 : f32 to vector<8x32xf32>
    %253 = arith.subf %252, %245 : vector<8x32xf32>
    %254 = arith.mulf %253, %251 : vector<8x32xf32>
    %255 = arith.mulf %245, %227 : vector<8x32xf32>
    %256 = arith.addf %254, %255 : vector<8x32xf32>
    %c0_53 = arith.constant 0 : index
    %c0_54 = arith.constant 0 : index
    %257 = vector.load %arg6[%c0_53, %c0_54] : memref<8x32xf32, #tpu.memory_space<vmem>>, vector<8x32xf32>
    tpu.vector_store %arg6[%c0_53, %c0_54], %256 {strides = array<i32>} : memref<8x32xf32, #tpu.memory_space<vmem>>, vector<8x32xf32>,
    %258 = tpu.concatenate %53, %82, %111, %140, %169, %198, %227, %256 in 0 : vector<8x32xf32>, vector<8x32xf32>, vector<8x32xf32>, vector<8x32xf32>, vector<8x32xf32>, vector<8x32xf32>, vector<8x32xf32>, vector<8x32xf32> -> vector<64x32xf32>
    %cst_55 = arith.constant dense<0.000000e+00> : vector<64x128xf32>
    %259 = tpu.matmul %258, %12, %cst_55 {dimension_numbers = #tpu.dot_dimension_numbers<[1], [0], [0], [1], [0, 0, 1, 1], [], []>} : vector<64x32xf32>, vector<32x128xf32>, vector<64x128xf32> -> vector<64x128xf32>
    %260 = vector.broadcast %13 : vector<1x128xf32> to vector<64x128xf32>
    %261 = arith.addf %259, %260 : vector<64x128xf32>
    %262 = math.tanh %261 : vector<64x128xf32>
    %cst_56 = arith.constant dense<0.000000e+00> : vector<64x128xf32>
    %263 = tpu.matmul %262, %14, %cst_56 {dimension_numbers = #tpu.dot_dimension_numbers<[1], [0], [0], [1], [0, 0, 1, 1], [], []>} : vector<64x128xf32>, vector<128x128xf32>, vector<64x128xf32> -> vector<64x128xf32>
    %264 = vector.broadcast %15 : vector<1x128xf32> to vector<64x128xf32>
    %265 = arith.addf %263, %264 : vector<64x128xf32>
    %c0_57 = arith.constant 0 : index
    %c0_58 = arith.constant 0 : index
    %266 = vector.load %arg4[%c0_57, %c0_58] : memref<64x128xf32, #tpu.memory_space<vmem>>, vector<64x128xf32>
    tpu.vector_store %arg4[%c0_57, %c0_58], %265 {strides = array<i32>} : memref<64x128xf32, #tpu.memory_space<vmem>>, vector<64x128xf32>,
    %267 = vector.extract_strided_slice %23 {offsets = [0, 0], sizes = [8, 128], strides = [1, 1]} : vector<64x128xf32> to vector<8x128xf32>
    %cst_59 = arith.constant dense<0.000000e+00> : vector<8x128xf32>
    %268 = tpu.matmul %256, %7, %cst_59 {dimension_numbers = #tpu.dot_dimension_numbers<[1], [0], [0], [1], [0, 0, 1, 1], [], []>} : vector<8x32xf32>, vector<32x128xf32>, vector<8x128xf32> -> vector<8x128xf32>
    %269 = vector.extract_strided_slice %267 {offsets = [0, 0], sizes = [8, 32], strides = [1, 1]} : vector<8x128xf32> to vector<8x32xf32>
    %270 = vector.extract_strided_slice %268 {offsets = [0, 0], sizes = [8, 32], strides = [1, 1]} : vector<8x128xf32> to vector<8x32xf32>
    %271 = arith.addf %269, %270 : vector<8x32xf32>
    %272 = arith.negf %271 : vector<8x32xf32>
    %273 = math.exp %272 : vector<8x32xf32>
    %cst_60 = arith.constant 1.000000e+00 : f32
    %274 = vector.broadcast %cst_60 : f32 to vector<8x32xf32>
    %275 = arith.addf %274, %273 : vector<8x32xf32>
    %276 = arith.divf %274, %275 : vector<8x32xf32>
    %277 = vector.extract_strided_slice %267 {offsets = [0, 32], sizes = [8, 32], strides = [1, 1]} : vector<8x128xf32> to vector<8x32xf32>
    %278 = vector.extract_strided_slice %268 {offsets = [0, 32], sizes = [8, 32], strides = [1, 1]} : vector<8x128xf32> to vector<8x32xf32>
    %279 = arith.addf %277, %278 : vector<8x32xf32>
    %280 = arith.negf %279 : vector<8x32xf32>
    %281 = math.exp %280 : vector<8x32xf32>
    %cst_61 = arith.constant 1.000000e+00 : f32
    %282 = vector.broadcast %cst_61 : f32 to vector<8x32xf32>
    %283 = arith.addf %282, %281 : vector<8x32xf32>
    %284 = arith.divf %282, %283 : vector<8x32xf32>
    %285 = vector.extract_strided_slice %267 {offsets = [0, 64], sizes = [8, 32], strides = [1, 1]} : vector<8x128xf32> to vector<8x32xf32>
    %286 = vector.extract_strided_slice %268 {offsets = [0, 64], sizes = [8, 32], strides = [1, 1]} : vector<8x128xf32> to vector<8x32xf32>
    %287 = arith.addf %286, %11 : vector<8x32xf32>
    %288 = arith.mulf %276, %287 : vector<8x32xf32>
    %289 = arith.addf %285, %288 : vector<8x32xf32>
    %290 = math.tanh %289 : vector<8x32xf32>
    %cst_62 = arith.constant 1.000000e+00 : f32
    %291 = vector.broadcast %cst_62 : f32 to vector<8x32xf32>
    %292 = arith.subf %291, %284 : vector<8x32xf32>
    %293 = arith.mulf %292, %290 : vector<8x32xf32>
    %294 = arith.mulf %284, %256 : vector<8x32xf32>
    %295 = arith.addf %293, %294 : vector<8x32xf32>
    %296 = vector.extract_strided_slice %23 {offsets = [8, 0], sizes = [8, 128], strides = [1, 1]} : vector<64x128xf32> to vector<8x128xf32>
    %cst_63 = arith.constant dense<0.000000e+00> : vector<8x128xf32>
    %297 = tpu.matmul %295, %7, %cst_63 {dimension_numbers = #tpu.dot_dimension_numbers<[1], [0], [0], [1], [0, 0, 1, 1], [], []>} : vector<8x32xf32>, vector<32x128xf32>, vector<8x128xf32> -> vector<8x128xf32>
    %298 = vector.extract_strided_slice %296 {offsets = [0, 0], sizes = [8, 32], strides = [1, 1]} : vector<8x128xf32> to vector<8x32xf32>
    %299 = vector.extract_strided_slice %297 {offsets = [0, 0], sizes = [8, 32], strides = [1, 1]} : vector<8x128xf32> to vector<8x32xf32>
    %300 = arith.addf %298, %299 : vector<8x32xf32>
    %301 = arith.negf %300 : vector<8x32xf32>
    %302 = math.exp %301 : vector<8x32xf32>
    %cst_64 = arith.constant 1.000000e+00 : f32
    %303 = vector.broadcast %cst_64 : f32 to vector<8x32xf32>
    %304 = arith.addf %303, %302 : vector<8x32xf32>
    %305 = arith.divf %303, %304 : vector<8x32xf32>
    %306 = vector.extract_strided_slice %296 {offsets = [0, 32], sizes = [8, 32], strides = [1, 1]} : vector<8x128xf32> to vector<8x32xf32>
    %307 = vector.extract_strided_slice %297 {offsets = [0, 32], sizes = [8, 32], strides = [1, 1]} : vector<8x128xf32> to vector<8x32xf32>
    %308 = arith.addf %306, %307 : vector<8x32xf32>
    %309 = arith.negf %308 : vector<8x32xf32>
    %310 = math.exp %309 : vector<8x32xf32>
    %cst_65 = arith.constant 1.000000e+00 : f32
    %311 = vector.broadcast %cst_65 : f32 to vector<8x32xf32>
    %312 = arith.addf %311, %310 : vector<8x32xf32>
    %313 = arith.divf %311, %312 : vector<8x32xf32>
    %314 = vector.extract_strided_slice %296 {offsets = [0, 64], sizes = [8, 32], strides = [1, 1]} : vector<8x128xf32> to vector<8x32xf32>
    %315 = vector.extract_strided_slice %297 {offsets = [0, 64], sizes = [8, 32], strides = [1, 1]} : vector<8x128xf32> to vector<8x32xf32>
    %316 = arith.addf %315, %11 : vector<8x32xf32>
    %317 = arith.mulf %305, %316 : vector<8x32xf32>
    %318 = arith.addf %314, %317 : vector<8x32xf32>
    %319 = math.tanh %318 : vector<8x32xf32>
    %cst_66 = arith.constant 1.000000e+00 : f32
    %320 = vector.broadcast %cst_66 : f32 to vector<8x32xf32>
    %321 = arith.subf %320, %313 : vector<8x32xf32>
    %322 = arith.mulf %321, %319 : vector<8x32xf32>
    %323 = arith.mulf %313, %295 : vector<8x32xf32>
    %324 = arith.addf %322, %323 : vector<8x32xf32>
    %325 = vector.extract_strided_slice %23 {offsets = [16, 0], sizes = [8, 128], strides = [1, 1]} : vector<64x128xf32> to vector<8x128xf32>
    %cst_67 = arith.constant dense<0.000000e+00> : vector<8x128xf32>
    %326 = tpu.matmul %324, %7, %cst_67 {dimension_numbers = #tpu.dot_dimension_numbers<[1], [0], [0], [1], [0, 0, 1, 1], [], []>} : vector<8x32xf32>, vector<32x128xf32>, vector<8x128xf32> -> vector<8x128xf32>
    %327 = vector.extract_strided_slice %325 {offsets = [0, 0], sizes = [8, 32], strides = [1, 1]} : vector<8x128xf32> to vector<8x32xf32>
    %328 = vector.extract_strided_slice %326 {offsets = [0, 0], sizes = [8, 32], strides = [1, 1]} : vector<8x128xf32> to vector<8x32xf32>
    %329 = arith.addf %327, %328 : vector<8x32xf32>
    %330 = arith.negf %329 : vector<8x32xf32>
    %331 = math.exp %330 : vector<8x32xf32>
    %cst_68 = arith.constant 1.000000e+00 : f32
    %332 = vector.broadcast %cst_68 : f32 to vector<8x32xf32>
    %333 = arith.addf %332, %331 : vector<8x32xf32>
    %334 = arith.divf %332, %333 : vector<8x32xf32>
    %335 = vector.extract_strided_slice %325 {offsets = [0, 32], sizes = [8, 32], strides = [1, 1]} : vector<8x128xf32> to vector<8x32xf32>
    %336 = vector.extract_strided_slice %326 {offsets = [0, 32], sizes = [8, 32], strides = [1, 1]} : vector<8x128xf32> to vector<8x32xf32>
    %337 = arith.addf %335, %336 : vector<8x32xf32>
    %338 = arith.negf %337 : vector<8x32xf32>
    %339 = math.exp %338 : vector<8x32xf32>
    %cst_69 = arith.constant 1.000000e+00 : f32
    %340 = vector.broadcast %cst_69 : f32 to vector<8x32xf32>
    %341 = arith.addf %340, %339 : vector<8x32xf32>
    %342 = arith.divf %340, %341 : vector<8x32xf32>
    %343 = vector.extract_strided_slice %325 {offsets = [0, 64], sizes = [8, 32], strides = [1, 1]} : vector<8x128xf32> to vector<8x32xf32>
    %344 = vector.extract_strided_slice %326 {offsets = [0, 64], sizes = [8, 32], strides = [1, 1]} : vector<8x128xf32> to vector<8x32xf32>
    %345 = arith.addf %344, %11 : vector<8x32xf32>
    %346 = arith.mulf %334, %345 : vector<8x32xf32>
    %347 = arith.addf %343, %346 : vector<8x32xf32>
    %348 = math.tanh %347 : vector<8x32xf32>
    %cst_70 = arith.constant 1.000000e+00 : f32
    %349 = vector.broadcast %cst_70 : f32 to vector<8x32xf32>
    %350 = arith.subf %349, %342 : vector<8x32xf32>
    %351 = arith.mulf %350, %348 : vector<8x32xf32>
    %352 = arith.mulf %342, %324 : vector<8x32xf32>
    %353 = arith.addf %351, %352 : vector<8x32xf32>
    %354 = vector.extract_strided_slice %23 {offsets = [24, 0], sizes = [8, 128], strides = [1, 1]} : vector<64x128xf32> to vector<8x128xf32>
    %cst_71 = arith.constant dense<0.000000e+00> : vector<8x128xf32>
    %355 = tpu.matmul %353, %7, %cst_71 {dimension_numbers = #tpu.dot_dimension_numbers<[1], [0], [0], [1], [0, 0, 1, 1], [], []>} : vector<8x32xf32>, vector<32x128xf32>, vector<8x128xf32> -> vector<8x128xf32>
    %356 = vector.extract_strided_slice %354 {offsets = [0, 0], sizes = [8, 32], strides = [1, 1]} : vector<8x128xf32> to vector<8x32xf32>
    %357 = vector.extract_strided_slice %355 {offsets = [0, 0], sizes = [8, 32], strides = [1, 1]} : vector<8x128xf32> to vector<8x32xf32>
    %358 = arith.addf %356, %357 : vector<8x32xf32>
    %359 = arith.negf %358 : vector<8x32xf32>
    %360 = math.exp %359 : vector<8x32xf32>
    %cst_72 = arith.constant 1.000000e+00 : f32
    %361 = vector.broadcast %cst_72 : f32 to vector<8x32xf32>
    %362 = arith.addf %361, %360 : vector<8x32xf32>
    %363 = arith.divf %361, %362 : vector<8x32xf32>
    %364 = vector.extract_strided_slice %354 {offsets = [0, 32], sizes = [8, 32], strides = [1, 1]} : vector<8x128xf32> to vector<8x32xf32>
    %365 = vector.extract_strided_slice %355 {offsets = [0, 32], sizes = [8, 32], strides = [1, 1]} : vector<8x128xf32> to vector<8x32xf32>
    %366 = arith.addf %364, %365 : vector<8x32xf32>
    %367 = arith.negf %366 : vector<8x32xf32>
    %368 = math.exp %367 : vector<8x32xf32>
    %cst_73 = arith.constant 1.000000e+00 : f32
    %369 = vector.broadcast %cst_73 : f32 to vector<8x32xf32>
    %370 = arith.addf %369, %368 : vector<8x32xf32>
    %371 = arith.divf %369, %370 : vector<8x32xf32>
    %372 = vector.extract_strided_slice %354 {offsets = [0, 64], sizes = [8, 32], strides = [1, 1]} : vector<8x128xf32> to vector<8x32xf32>
    %373 = vector.extract_strided_slice %355 {offsets = [0, 64], sizes = [8, 32], strides = [1, 1]} : vector<8x128xf32> to vector<8x32xf32>
    %374 = arith.addf %373, %11 : vector<8x32xf32>
    %375 = arith.mulf %363, %374 : vector<8x32xf32>
    %376 = arith.addf %372, %375 : vector<8x32xf32>
    %377 = math.tanh %376 : vector<8x32xf32>
    %cst_74 = arith.constant 1.000000e+00 : f32
    %378 = vector.broadcast %cst_74 : f32 to vector<8x32xf32>
    %379 = arith.subf %378, %371 : vector<8x32xf32>
    %380 = arith.mulf %379, %377 : vector<8x32xf32>
    %381 = arith.mulf %371, %353 : vector<8x32xf32>
    %382 = arith.addf %380, %381 : vector<8x32xf32>
    %383 = vector.extract_strided_slice %23 {offsets = [32, 0], sizes = [8, 128], strides = [1, 1]} : vector<64x128xf32> to vector<8x128xf32>
    %cst_75 = arith.constant dense<0.000000e+00> : vector<8x128xf32>
    %384 = tpu.matmul %382, %7, %cst_75 {dimension_numbers = #tpu.dot_dimension_numbers<[1], [0], [0], [1], [0, 0, 1, 1], [], []>} : vector<8x32xf32>, vector<32x128xf32>, vector<8x128xf32> -> vector<8x128xf32>
    %385 = vector.extract_strided_slice %383 {offsets = [0, 0], sizes = [8, 32], strides = [1, 1]} : vector<8x128xf32> to vector<8x32xf32>
    %386 = vector.extract_strided_slice %384 {offsets = [0, 0], sizes = [8, 32], strides = [1, 1]} : vector<8x128xf32> to vector<8x32xf32>
    %387 = arith.addf %385, %386 : vector<8x32xf32>
    %388 = arith.negf %387 : vector<8x32xf32>
    %389 = math.exp %388 : vector<8x32xf32>
    %cst_76 = arith.constant 1.000000e+00 : f32
    %390 = vector.broadcast %cst_76 : f32 to vector<8x32xf32>
    %391 = arith.addf %390, %389 : vector<8x32xf32>
    %392 = arith.divf %390, %391 : vector<8x32xf32>
    %393 = vector.extract_strided_slice %383 {offsets = [0, 32], sizes = [8, 32], strides = [1, 1]} : vector<8x128xf32> to vector<8x32xf32>
    %394 = vector.extract_strided_slice %384 {offsets = [0, 32], sizes = [8, 32], strides = [1, 1]} : vector<8x128xf32> to vector<8x32xf32>
    %395 = arith.addf %393, %394 : vector<8x32xf32>
    %396 = arith.negf %395 : vector<8x32xf32>
    %397 = math.exp %396 : vector<8x32xf32>
    %cst_77 = arith.constant 1.000000e+00 : f32
    %398 = vector.broadcast %cst_77 : f32 to vector<8x32xf32>
    %399 = arith.addf %398, %397 : vector<8x32xf32>
    %400 = arith.divf %398, %399 : vector<8x32xf32>
    %401 = vector.extract_strided_slice %383 {offsets = [0, 64], sizes = [8, 32], strides = [1, 1]} : vector<8x128xf32> to vector<8x32xf32>
    %402 = vector.extract_strided_slice %384 {offsets = [0, 64], sizes = [8, 32], strides = [1, 1]} : vector<8x128xf32> to vector<8x32xf32>
    %403 = arith.addf %402, %11 : vector<8x32xf32>
    %404 = arith.mulf %392, %403 : vector<8x32xf32>
    %405 = arith.addf %401, %404 : vector<8x32xf32>
    %406 = math.tanh %405 : vector<8x32xf32>
    %cst_78 = arith.constant 1.000000e+00 : f32
    %407 = vector.broadcast %cst_78 : f32 to vector<8x32xf32>
    %408 = arith.subf %407, %400 : vector<8x32xf32>
    %409 = arith.mulf %408, %406 : vector<8x32xf32>
    %410 = arith.mulf %400, %382 : vector<8x32xf32>
    %411 = arith.addf %409, %410 : vector<8x32xf32>
    %412 = vector.extract_strided_slice %23 {offsets = [40, 0], sizes = [8, 128], strides = [1, 1]} : vector<64x128xf32> to vector<8x128xf32>
    %cst_79 = arith.constant dense<0.000000e+00> : vector<8x128xf32>
    %413 = tpu.matmul %411, %7, %cst_79 {dimension_numbers = #tpu.dot_dimension_numbers<[1], [0], [0], [1], [0, 0, 1, 1], [], []>} : vector<8x32xf32>, vector<32x128xf32>, vector<8x128xf32> -> vector<8x128xf32>
    %414 = vector.extract_strided_slice %412 {offsets = [0, 0], sizes = [8, 32], strides = [1, 1]} : vector<8x128xf32> to vector<8x32xf32>
    %415 = vector.extract_strided_slice %413 {offsets = [0, 0], sizes = [8, 32], strides = [1, 1]} : vector<8x128xf32> to vector<8x32xf32>
    %416 = arith.addf %414, %415 : vector<8x32xf32>
    %417 = arith.negf %416 : vector<8x32xf32>
    %418 = math.exp %417 : vector<8x32xf32>
    %cst_80 = arith.constant 1.000000e+00 : f32
    %419 = vector.broadcast %cst_80 : f32 to vector<8x32xf32>
    %420 = arith.addf %419, %418 : vector<8x32xf32>
    %421 = arith.divf %419, %420 : vector<8x32xf32>
    %422 = vector.extract_strided_slice %412 {offsets = [0, 32], sizes = [8, 32], strides = [1, 1]} : vector<8x128xf32> to vector<8x32xf32>
    %423 = vector.extract_strided_slice %413 {offsets = [0, 32], sizes = [8, 32], strides = [1, 1]} : vector<8x128xf32> to vector<8x32xf32>
    %424 = arith.addf %422, %423 : vector<8x32xf32>
    %425 = arith.negf %424 : vector<8x32xf32>
    %426 = math.exp %425 : vector<8x32xf32>
    %cst_81 = arith.constant 1.000000e+00 : f32
    %427 = vector.broadcast %cst_81 : f32 to vector<8x32xf32>
    %428 = arith.addf %427, %426 : vector<8x32xf32>
    %429 = arith.divf %427, %428 : vector<8x32xf32>
    %430 = vector.extract_strided_slice %412 {offsets = [0, 64], sizes = [8, 32], strides = [1, 1]} : vector<8x128xf32> to vector<8x32xf32>
    %431 = vector.extract_strided_slice %413 {offsets = [0, 64], sizes = [8, 32], strides = [1, 1]} : vector<8x128xf32> to vector<8x32xf32>
    %432 = arith.addf %431, %11 : vector<8x32xf32>
    %433 = arith.mulf %421, %432 : vector<8x32xf32>
    %434 = arith.addf %430, %433 : vector<8x32xf32>
    %435 = math.tanh %434 : vector<8x32xf32>
    %cst_82 = arith.constant 1.000000e+00 : f32
    %436 = vector.broadcast %cst_82 : f32 to vector<8x32xf32>
    %437 = arith.subf %436, %429 : vector<8x32xf32>
    %438 = arith.mulf %437, %435 : vector<8x32xf32>
    %439 = arith.mulf %429, %411 : vector<8x32xf32>
    %440 = arith.addf %438, %439 : vector<8x32xf32>
    %441 = vector.extract_strided_slice %23 {offsets = [48, 0], sizes = [8, 128], strides = [1, 1]} : vector<64x128xf32> to vector<8x128xf32>
    %cst_83 = arith.constant dense<0.000000e+00> : vector<8x128xf32>
    %442 = tpu.matmul %440, %7, %cst_83 {dimension_numbers = #tpu.dot_dimension_numbers<[1], [0], [0], [1], [0, 0, 1, 1], [], []>} : vector<8x32xf32>, vector<32x128xf32>, vector<8x128xf32> -> vector<8x128xf32>
    %443 = vector.extract_strided_slice %441 {offsets = [0, 0], sizes = [8, 32], strides = [1, 1]} : vector<8x128xf32> to vector<8x32xf32>
    %444 = vector.extract_strided_slice %442 {offsets = [0, 0], sizes = [8, 32], strides = [1, 1]} : vector<8x128xf32> to vector<8x32xf32>
    %445 = arith.addf %443, %444 : vector<8x32xf32>
    %446 = arith.negf %445 : vector<8x32xf32>
    %447 = math.exp %446 : vector<8x32xf32>
    %cst_84 = arith.constant 1.000000e+00 : f32
    %448 = vector.broadcast %cst_84 : f32 to vector<8x32xf32>
    %449 = arith.addf %448, %447 : vector<8x32xf32>
    %450 = arith.divf %448, %449 : vector<8x32xf32>
    %451 = vector.extract_strided_slice %441 {offsets = [0, 32], sizes = [8, 32], strides = [1, 1]} : vector<8x128xf32> to vector<8x32xf32>
    %452 = vector.extract_strided_slice %442 {offsets = [0, 32], sizes = [8, 32], strides = [1, 1]} : vector<8x128xf32> to vector<8x32xf32>
    %453 = arith.addf %451, %452 : vector<8x32xf32>
    %454 = arith.negf %453 : vector<8x32xf32>
    %455 = math.exp %454 : vector<8x32xf32>
    %cst_85 = arith.constant 1.000000e+00 : f32
    %456 = vector.broadcast %cst_85 : f32 to vector<8x32xf32>
    %457 = arith.addf %456, %455 : vector<8x32xf32>
    %458 = arith.divf %456, %457 : vector<8x32xf32>
    %459 = vector.extract_strided_slice %441 {offsets = [0, 64], sizes = [8, 32], strides = [1, 1]} : vector<8x128xf32> to vector<8x32xf32>
    %460 = vector.extract_strided_slice %442 {offsets = [0, 64], sizes = [8, 32], strides = [1, 1]} : vector<8x128xf32> to vector<8x32xf32>
    %461 = arith.addf %460, %11 : vector<8x32xf32>
    %462 = arith.mulf %450, %461 : vector<8x32xf32>
    %463 = arith.addf %459, %462 : vector<8x32xf32>
    %464 = math.tanh %463 : vector<8x32xf32>
    %cst_86 = arith.constant 1.000000e+00 : f32
    %465 = vector.broadcast %cst_86 : f32 to vector<8x32xf32>
    %466 = arith.subf %465, %458 : vector<8x32xf32>
    %467 = arith.mulf %466, %464 : vector<8x32xf32>
    %468 = arith.mulf %458, %440 : vector<8x32xf32>
    %469 = arith.addf %467, %468 : vector<8x32xf32>
    %470 = vector.extract_strided_slice %23 {offsets = [56, 0], sizes = [8, 128], strides = [1, 1]} : vector<64x128xf32> to vector<8x128xf32>
    %cst_87 = arith.constant dense<0.000000e+00> : vector<8x128xf32>
    %471 = tpu.matmul %469, %7, %cst_87 {dimension_numbers = #tpu.dot_dimension_numbers<[1], [0], [0], [1], [0, 0, 1, 1], [], []>} : vector<8x32xf32>, vector<32x128xf32>, vector<8x128xf32> -> vector<8x128xf32>
    %472 = vector.extract_strided_slice %470 {offsets = [0, 0], sizes = [8, 32], strides = [1, 1]} : vector<8x128xf32> to vector<8x32xf32>
    %473 = vector.extract_strided_slice %471 {offsets = [0, 0], sizes = [8, 32], strides = [1, 1]} : vector<8x128xf32> to vector<8x32xf32>
    %474 = arith.addf %472, %473 : vector<8x32xf32>
    %475 = arith.negf %474 : vector<8x32xf32>
    %476 = math.exp %475 : vector<8x32xf32>
    %cst_88 = arith.constant 1.000000e+00 : f32
    %477 = vector.broadcast %cst_88 : f32 to vector<8x32xf32>
    %478 = arith.addf %477, %476 : vector<8x32xf32>
    %479 = arith.divf %477, %478 : vector<8x32xf32>
    %480 = vector.extract_strided_slice %470 {offsets = [0, 32], sizes = [8, 32], strides = [1, 1]} : vector<8x128xf32> to vector<8x32xf32>
    %481 = vector.extract_strided_slice %471 {offsets = [0, 32], sizes = [8, 32], strides = [1, 1]} : vector<8x128xf32> to vector<8x32xf32>
    %482 = arith.addf %480, %481 : vector<8x32xf32>
    %483 = arith.negf %482 : vector<8x32xf32>
    %484 = math.exp %483 : vector<8x32xf32>
    %cst_89 = arith.constant 1.000000e+00 : f32
    %485 = vector.broadcast %cst_89 : f32 to vector<8x32xf32>
    %486 = arith.addf %485, %484 : vector<8x32xf32>
    %487 = arith.divf %485, %486 : vector<8x32xf32>
    %488 = vector.extract_strided_slice %470 {offsets = [0, 64], sizes = [8, 32], strides = [1, 1]} : vector<8x128xf32> to vector<8x32xf32>
    %489 = vector.extract_strided_slice %471 {offsets = [0, 64], sizes = [8, 32], strides = [1, 1]} : vector<8x128xf32> to vector<8x32xf32>
    %490 = arith.addf %489, %11 : vector<8x32xf32>
    %491 = arith.mulf %479, %490 : vector<8x32xf32>
    %492 = arith.addf %488, %491 : vector<8x32xf32>
    %493 = math.tanh %492 : vector<8x32xf32>
    %cst_90 = arith.constant 1.000000e+00 : f32
    %494 = vector.broadcast %cst_90 : f32 to vector<8x32xf32>
    %495 = arith.subf %494, %487 : vector<8x32xf32>
    %496 = arith.mulf %495, %493 : vector<8x32xf32>
    %497 = arith.mulf %487, %469 : vector<8x32xf32>
    %498 = arith.addf %496, %497 : vector<8x32xf32>
    %499 = tpu.concatenate %295, %324, %353, %382, %411, %440, %469, %498 in 0 : vector<8x32xf32>, vector<8x32xf32>, vector<8x32xf32>, vector<8x32xf32>, vector<8x32xf32>, vector<8x32xf32>, vector<8x32xf32>, vector<8x32xf32> -> vector<64x32xf32>
    %cst_91 = arith.constant dense<0.000000e+00> : vector<64x128xf32>
    %500 = tpu.matmul %499, %16, %cst_91 {dimension_numbers = #tpu.dot_dimension_numbers<[1], [0], [0], [1], [0, 0, 1, 1], [], []>} : vector<64x32xf32>, vector<32x128xf32>, vector<64x128xf32> -> vector<64x128xf32>
    %501 = vector.broadcast %17 : vector<1x128xf32> to vector<64x128xf32>
    %502 = arith.addf %500, %501 : vector<64x128xf32>
    %503 = math.tanh %502 : vector<64x128xf32>
    %cst_92 = arith.constant dense<0.000000e+00> : vector<64x128xf32>
    %504 = tpu.matmul %503, %18, %cst_92 {dimension_numbers = #tpu.dot_dimension_numbers<[1], [0], [0], [1], [0, 0, 1, 1], [], []>} : vector<64x128xf32>, vector<128x128xf32>, vector<64x128xf32> -> vector<64x128xf32>
    %505 = vector.broadcast %19 : vector<1x128xf32> to vector<64x128xf32>
    %506 = arith.addf %504, %505 : vector<64x128xf32>
    %c0_93 = arith.constant 0 : index
    %c0_94 = arith.constant 0 : index
    %507 = vector.load %arg5[%c0_93, %c0_94] : memref<64x128xf32, #tpu.memory_space<vmem>>, vector<64x128xf32>
    tpu.vector_store %arg5[%c0_93, %c0_94], %506 {strides = array<i32>} : memref<64x128xf32, #tpu.memory_space<vmem>>, vector<64x128xf32>,
    return
  }
}

</mosaic_0001>

<bundles_post_ra>
// kernel: tpu_custom_call.1
= control target key start
LH: loop header
LB: loop body
LE: loop exit
PB: predicated region body
PF: predicated region fallthrough
CT: control target
= control target key end

     0   :  { %12 = vsyncpa [#allocation3], 0  ;;  %s2351_s0 = inlined_call_operand.vmem [shape: f32[64,24], index: 0, kind: input, shape index: {}]   ;;  %s2352_s1 = inlined_call_operand.vmem [shape: f32[64,16], index: 1, kind: input, shape index: {}]   ;;  %s2353_s2 = inlined_call_operand.vmem [shape: f32[120,128], index: 2, kind: input, shape index: {}]   ;;  %s2354_s3 = inlined_call_operand.hbm [shape: f32[352,128], index: 3, kind: input, shape index: {}]   ;;  %s2355_s4 = inlined_call_operand.hbm [shape: f32[64,128], index: 4, kind: output, shape index: {0}]   ;;  %s2356_s5 = inlined_call_operand.hbm [shape: f32[64,128], index: 5, kind: output, shape index: {1}]   ;;  %s2357_s6 = inlined_call_operand.hbm [shape: f32[8,32], index: 6, kind: output, shape index: {2}]  }
   0x1   :  { %13 = vsyncpa [#allocation4], 0 }
   0x2   :  { %14 = vsyncpa [#allocation7], 0  ;;  %s25_s23 = sshll.u32 %s2354_s3, 4  ;;  %s1861_s24 = smov [#allocation2]   ;;  %s26_s23 = int_to_ptr.hbm [resolvable:$true] %s25_s23 }
   0x3   :  { %s27_s25 = sshll.u32 %s1861_s24, 4  ;;  %s1862_s26 = smov 128   ;;  %s28_s25 = int_to_ptr.vmem [resolvable:$true] %s27_s25 }
   0x4   :  { %s1863_s27 = smov 8  }
   0x5   :  { %33 = dma.hbm_to_vmem [thread:$0]  %s26_s23, 5632, %s28_s25, [#allocation3], %s1862_s26, %s1862_s26, %s1863_s27  }
   0x6   :  { %1855 = dma.done.wait [#allocation3], 5632  }
   0x7   :  { %1856 = vsyncadd [#allocation3], 4294961664  ;;  %v48_v0 = vld [vmem:[%s2353_s2 + $0x48] sm:$0xff]  ;;  %v47_v1 = vld [vmem:[%s2353_s2 + $0x40] sm:$0xff]  ;;  %vm181_vm0 = vcmask 130048   ;;  %vm107_vm1 = vcmask 195584  }
   0x8   :  { %1608 = vmatpush.msra.mxu2 %v48_v0  ;;  %v178_v2 = vld [vmem:[%s2352_s1 + $0x28] sm:$0xff]  ;;  %1609 = vmatpush.msra.mxu3 %v48_v0  ;;  %v1923_v3 = vld [vmem:[%s2353_s2 + $0x30] sm:$0xff]  ;;  %v38_v7 = vld [vmem:[%s2353_s2] sm:$0xff]  ;;  %v1864_v11 = vmov 0.0   ;;  %s1865_s29 = smov 64   ;;  %s1866_s30 = smov 96  }
   0x9   :  { %v40_v4 = vld [vmem:[%s2353_s2 + $0x10] sm:$0xff]  ;;  %v39_v5 = vld [vmem:[%s2353_s2 + $0x8] sm:$0xff]  ;;  %220 = vmatpush.msra.mxu1 %v48_v0  ;;  %v99_v8 = vld [vmem:[%s2351_s0] sm:$0xff]  ;;  %vm247_vm6 = vcmask 261120   ;;  %s1499_s21 = sshll.u32 %s2355_s4, 4  ;;  %s1867_s22 = smov [#allocation5]   ;;  %s1500_s21 = int_to_ptr.hbm [resolvable:$true] %s1499_s21 }
   0xa   :  { %1610 = vmatpush.msra.mxu2 %v47_v1  ;;  %v1934_v6 = vld [vmem:[%s2353_s2 + $0x28] sm:$0xff]  ;;  %145 = vmatpush.msra.mxu0 %v40_v4  ;;  %v1947_v9 = vld [vmem:[%s2353_s2 + $0x20] sm:$0xff]  ;;  %v1954_v10 = vld [vmem:[%s2353_s2 + $0x18] sm:$0xff]  ;;  %s1497_s23 = sshll.u32 %s1867_s22, 4  ;;  %s1512_s28 = sshll.u32 %s2356_s5, 4  ;;  %s1498_s23 = int_to_ptr.vmem [resolvable:$true] %s1497_s23  ;;  %s1513_s28 = int_to_ptr.hbm [resolvable:$true] %s1512_s28 }
   0xb   :  { %1558 = vmatmul.msk.f32.vlgmr.msra.gmra.mxu2 %vm181_vm0, %v178_v2  ;;  %1611 = vmatpush.msra.mxu3 %v47_v1  ;;  %v1975_v13 = vld [vmem:[%s2353_s2 + $0x38] ss:$0 sm:$0xff]  ;;  %v100_v36 = vld [vmem:[%s2351_s0 + $0x8] sm:$0xff]  ;;  %v101_v37 = vld [vmem:[%s2351_s0 + $0x10] sm:$0xff]  ;;  %s1869_s7 = smov [#allocation8]   ;;  %s1526_s4 = sshll.u32 %s2357_s6, 4  ;;  %s1527_s4 = int_to_ptr.hbm [resolvable:$true] %s1526_s4 }
   0xc   :  { %263 = vmatpush.msrb.mxu2 %v1923_v3  ;;  %146 = vmatpush.msra.mxu0 %v39_v5  ;;  %v179_v38 = vld [vmem:[%s2352_s1 + $0x30] sm:$0xff]  ;;  %v102_v39 = vld [vmem:[%s2351_s0 + $0x18] sm:$0xff]  ;;  %v2010_v43 = vld [vmem:[#allocation2 + $0x8] sm:$0xff]  ;;  %s1524_s3 = sshll.u32 %s1869_s7, 4  ;;  %s1525_s3 = int_to_ptr.vmem [resolvable:$true] %s1524_s3 }
   0xd   :  { %328 = vmatpush.msrb.mxu3 %v1923_v3  ;;  %221 = vmatpush.msra.mxu1 %v47_v1  ;;  %v180_v40 = vld [vmem:[%s2352_s1 + $0x38] sm:$0xff]  ;;  %v2005_v42 = vld [vmem:[#allocation2 + $0x10] sm:$0xff]  ;;  %v2013_v44 = vld [vmem:[#allocation2] sm:$0xff] }
   0xe   :  { %264 = vmatpush.msrb.mxu2 %v1934_v6  ;;  %147 = vmatpush.msra.mxu0 %v38_v7  ;;  %v2003_v41 = vld [vmem:[#allocation2 + $0x18] sm:$0xff]  ;;  %v103_v45 = vld [vmem:[%s2351_s0 + $0x20] sm:$0xff]  ;;  %v104_v51 = vld [vmem:[%s2351_s0 + $0x28] sm:$0xff] }
   0xf   :  { %1545 = vmatmul.msk.f32.vlgmr.msra.gmra.mxu0 %vm107_vm1, %v99_v8  ;;  %329 = vmatpush.msrb.mxu3 %v1934_v6  ;;  %v105_v52 = vld [vmem:[%s2351_s0 + $0x30] sm:$0xff]  ;;  %v106_v53 = vld [vmem:[%s2351_s0 + $0x38] sm:$0xff] }
  0x10   :  { %265 = vmatpush.msrb.mxu2 %v1947_v9  ;;  %1559 = vmatmul.msk.f32.vlgmr.msra.gmra.mxu3 %vm181_vm0, %v179_v38 }
  0x11   :  { %330 = vmatpush.msrb.mxu3 %v1947_v9  ;;  %786 = vmatpush.msrb.mxu0 %v2003_v41 }
  0x12   :  { %266 = vmatpush.msrb.mxu2 %v1954_v10 }
  0x13   :  { %267 = vmatmul.f32.vlgmr.msrb.gmra.mxu2 %v1864_v11  ;;  %331 = vmatpush.msrb.mxu3 %v1954_v10 }
  0x14   :  { %393 = vmatpush.msra.mxu2 %v1923_v3  ;;  %787 = vmatpush.msrb.mxu0 %v2005_v42 }
  0x15   :  { %458 = vmatpush.msra.mxu3 %v1923_v3 }
  0x16   :  { %394 = vmatpush.msra.mxu2 %v1934_v6  ;;  %788 = vmatpush.msrb.mxu0 %v2010_v43 }
  0x17   :  { %1546 = vmatmul.msk.f32.gmra.mxu0 %vm107_vm1, %v100_v36  ;;  %459 = vmatpush.msra.mxu3 %v1934_v6 }
  0x18   :  { %395 = vmatpush.msra.mxu2 %v1947_v9  ;;  %1560 = vmatmul.msk.f32.gmra.mxu3 %vm181_vm0, %v180_v40 }
  0x19   :  { %460 = vmatpush.msra.mxu3 %v1947_v9  ;;  %789 = vmatpush.msrb.mxu0 %v2013_v44 }
  0x1a   :  { %396 = vmatpush.msra.mxu2 %v1954_v10 }
  0x1b   :  { %461 = vmatpush.msra.mxu3 %v1954_v10 }
  0x1c   :  { %523 = vmatpush.msrb.mxu2 %v1923_v3 }
  0x1e   :  { %524 = vmatpush.msrb.mxu2 %v1934_v6 }
  0x1f   :  { %1547 = vmatmul.msk.f32.gmra.mxu0 %vm107_vm1, %v101_v37 }
  0x20   :  { %525 = vmatpush.msrb.mxu2 %v1947_v9 }
  0x22   :  { %526 = vmatpush.msrb.mxu2 %v1954_v10 }
  0x27   :  { %1548 = vmatmul.msk.f32.gmra.mxu0 %vm107_vm1, %v102_v39 }
  0x2f   :  { %1549 = vmatmul.msk.f32.gmra.mxu0 %vm107_vm1, %v103_v45 }
  0x37   :  { %1550 = vmatmul.msk.f32.gmra.mxu0 %vm107_vm1, %v104_v51 }
  0x3f   :  { %1551 = vmatmul.msk.f32.gmra.mxu0 %vm107_vm1, %v105_v52 }
  0x47   :  { %1552 = vmatmul.msk.f32.gmra.mxu0 %vm107_vm1, %v106_v53 }
  0x8c   :  { %v149_v16 = vpop.f32.mrf.mxu0 }
  0x8e   :  { %v1970_v12 = vpop.f32.mrf.mxu2 }
  0x93   :  { %v2040_v55 = vpop.f32.mrf.mxu3 }
  0x94   :  { %v152_v59 = vpop.f32.mrf.mxu0 }
  0x96   :  { %v268_v14 = vpop.f32.mrf.mxu2 }
  0x97   :  { %v291_v15 = vadd.f32 %v1975_v13, %v268_v14  ;;  %v271_v17 = vadd.f32 %v268_v14, %v149_v16 }
  0x99   :  { %293 = vrot.lane.b32.xlu0 %v291_v15, %s1865_s29  ;;  %v1561_v18 = vmul.f32 -1.442695, %v271_v17 }
  0x9b   :  { %1631 = vpow2.f32 %v1561_v18  ;;  %v2042_v56 = vpop.f32.mrf.mxu3 }
  0xa1   :  { %v1632_v19 = vpop.eup %1631 }
  0xa2   :  { %v275_v20 = vadd.f32 1.0, %v1632_v19 }
  0xa4   :  { %1633 = vrcp.f32 %v275_v20  ;;  %v287_v26 = vand.u32 2147483648, %v275_v20  ;;  %vm281_vm3 = vweird.f32 %v275_v20  ;;  %v285_v27 = vand.u32 2147483647, %v275_v20 }
  0xa6   :  { %v288_v29 = vor.u32 1.1754944e-38, %v287_v26  ;;  %vm286_vm5 = vcmp.eq.f32.partialorder %v285_v27, 8.507059e+37 }
  0xaa   :  { %v1634_v21 = vpop.eup %1633 }
  0xab   :  { %v277_v22 = vmul.f32 %v1634_v21, %v275_v20  ;;  %vm282_vm2 = vweird.f32 %v1634_v21 }
  0xac   :  { %vm283_vm4 = vmor %vm281_vm3, %vm282_vm2 }
  0xad   :  { %v278_v23 = vsub.f32 1.0, %v277_v22 }
  0xaf   :  { %v279_v24 = vmul.f32 %v1634_v21, %v278_v23 }
  0xb1   :  { %v280_v25 = vadd.f32 %v1634_v21, %v279_v24 }
  0xb3   :  { %v284_v28 = vsel %vm283_vm4, %v1634_v21, %v280_v25 }
  0xb4   :  { %v289_v31 = vsel %vm286_vm5, %v288_v29, %v284_v28  ;;  %v155_v29 = vpop.f32.mrf.mxu0 }
  0xb5   :  { %v303_v46 = vsub.f32 1.0, %v289_v31  ;;  %v309_v48 = vmul.f32 0.0, %v289_v31 }
 0x10b   :  { %v294_v30 = vpop.permute.xlu0 %293 }
 0x10c   :  { %v296_v32 = vmul.f32 %v294_v30, %v289_v31 }
 0x10e   :  { %298 = vrot.lane.b32.xlu0 %v296_v32, %s1865_s29 }
 0x180   :  { %v299_v33 = vpop.permute.xlu0 %298 }
 0x181   :  { %v301_v34 = vadd.f32 %v299_v33, %v149_v16 }
 0x183   :  { %1635 = vtanh.f32 %v301_v34 }
 0x189   :  { %v1636_v35 = vpop.eup %1635 }
 0x18a   :  { %305 = vrot.lane.b32.xlu1 %v1636_v35, %s1866_s30 }
 0x1fc   :  { %v306_v47 = vpop.permute.xlu1 %305 }
 0x1fd   :  { %v308_v49 = vmul.f32 %v306_v47, %v303_v46 }
 0x1ff   :  { %v310_v50 = vadd.f32 %v309_v48, %v308_v49 }
 0x201   :  { %312 = vrot.lane.b32.xlu1 %v310_v50, %s1866_s30 }
 0x273   :  { %v313_v54 = vpop.permute.xlu1 %312 }
 0x274   :  { %1562 = vmatmul.msk.f32.vlgmr.msrb.gmra.mxu3 %vm247_vm6, %v313_v54  ;;  %1576 = vmatmul.msk.f32.vlgmr.msrb.gmra.mxu0 %vm247_vm6, %v313_v54 }
 0x275   :  { %588 = vmatpush.msrb.mxu3 %v1923_v3 }
 0x277   :  { %589 = vmatpush.msrb.mxu3 %v1934_v6 }
 0x279   :  { %590 = vmatpush.msrb.mxu3 %v1947_v9 }
 0x27b   :  { %591 = vmatpush.msrb.mxu3 %v1954_v10 }
 0x2f7   :  { %v333_v57 = vpop.f32.mrf.mxu3 }
 0x2f8   :  { %v356_v58 = vadd.f32 %v1975_v13, %v333_v57  ;;  %v336_v60 = vadd.f32 %v333_v57, %v152_v59 }
 0x2fa   :  { %358 = vrot.lane.b32.xlu2 %v356_v58, %s1865_s29  ;;  %v1563_v61 = vmul.f32 -1.442695, %v336_v60 }
 0x2fc   :  { %1637 = vpow2.f32 %v1563_v61 }
 0x302   :  { %v1638_v62 = vpop.eup %1637 }
 0x303   :  { %v340_v63 = vadd.f32 1.0, %v1638_v62 }
 0x305   :  { %1639 = vrcp.f32 %v340_v63  ;;  %v352_v7 = vand.u32 2147483648, %v340_v63  ;;  %vm346_vm8 = vweird.f32 %v340_v63  ;;  %v350_v8 = vand.u32 2147483647, %v340_v63 }
 0x307   :  { %v353_v14 = vor.u32 1.1754944e-38, %v352_v7  ;;  %vm351_vm10 = vcmp.eq.f32.partialorder %v350_v8, 8.507059e+37 }
 0x30b   :  { %v1640_v0 = vpop.eup %1639 }
 0x30c   :  { %v342_v1 = vmul.f32 %v1640_v0, %v340_v63  ;;  %vm347_vm7 = vweird.f32 %v1640_v0  ;;  %v158_v63 = vpop.f32.mrf.mxu0 }
 0x30d   :  { %vm348_vm9 = vmor %vm346_vm8, %vm347_vm7 }
 0x30e   :  { %v343_v2 = vsub.f32 1.0, %v342_v1 }
 0x310   :  { %v344_v4 = vmul.f32 %v1640_v0, %v343_v2 }
 0x312   :  { %v345_v5 = vadd.f32 %v1640_v0, %v344_v4 }
 0x314   :  { %v349_v11 = vsel %vm348_vm9, %v1640_v0, %v345_v5 }
 0x315   :  { %v354_v16 = vsel %vm351_vm10, %v353_v14, %v349_v11 }
 0x316   :  { %v368_v21 = vsub.f32 1.0, %v354_v16  ;;  %v374_v23 = vmul.f32 %v354_v16, %v310_v50 }
 0x354   :  { %v359_v15 = vpop.permute.xlu2 %358 }
 0x355   :  { %v361_v17 = vmul.f32 %v359_v15, %v354_v16 }
 0x357   :  { %363 = vrot.lane.b32.xlu2 %v361_v17, %s1865_s29 }
 0x3b1   :  { %v364_v18 = vpop.permute.xlu2 %363 }
 0x3b2   :  { %v366_v19 = vadd.f32 %v364_v18, %v152_v59 }
 0x3b4   :  { %1641 = vtanh.f32 %v366_v19 }
 0x3ba   :  { %v1642_v20 = vpop.eup %1641 }
 0x3bb   :  { %370 = vrot.lane.b32.xlu0 %v1642_v20, %s1866_s30 }
 0x42d   :  { %v371_v22 = vpop.permute.xlu0 %370 }
 0x42e   :  { %v373_v24 = vmul.f32 %v371_v22, %v368_v21 }
 0x430   :  { %v375_v25 = vadd.f32 %v374_v23, %v373_v24 }
 0x432   :  { %377 = vrot.lane.b32.xlu1 %v375_v25, %s1866_s30 }
 0x4a4   :  { %v378_v26 = vpop.permute.xlu1 %377 }
 0x4a5   :  { %1564 = vmatmul.msk.f32.vlgmr.msra.gmra.mxu2 %vm247_vm6, %v378_v26  ;;  %1577 = vmatmul.msk.f32.gmra.mxu0 %vm247_vm6, %v378_v26 }
 0x4a6   :  { %653 = vmatpush.msra.mxu2 %v1923_v3 }
 0x4a8   :  { %654 = vmatpush.msra.mxu2 %v1934_v6 }
 0x4aa   :  { %655 = vmatpush.msra.mxu2 %v1947_v9 }
 0x4ac   :  { %656 = vmatpush.msra.mxu2 %v1954_v10 }
 0x528   :  { %v398_v27 = vpop.f32.mrf.mxu2 }
 0x529   :  { %v421_v28 = vadd.f32 %v1975_v13, %v398_v27  ;;  %v401_v30 = vadd.f32 %v398_v27, %v155_v29 }
 0x52b   :  { %423 = vrot.lane.b32.xlu2 %v421_v28, %s1865_s29  ;;  %v1565_v31 = vmul.f32 -1.442695, %v401_v30 }
 0x52d   :  { %1643 = vpow2.f32 %v1565_v31 }
 0x533   :  { %v1644_v32 = vpop.eup %1643 }
 0x534   :  { %v405_v33 = vadd.f32 1.0, %v1644_v32 }
 0x536   :  { %1645 = vrcp.f32 %v405_v33  ;;  %v417_v39 = vand.u32 2147483648, %v405_v33  ;;  %vm411_vm12 = vweird.f32 %v405_v33  ;;  %v415_v40 = vand.u32 2147483647, %v405_v33 }
 0x538   :  { %v418_v46 = vor.u32 1.1754944e-38, %v417_v39  ;;  %vm416_vm14 = vcmp.eq.f32.partialorder %v415_v40, 8.507059e+37 }
 0x53c   :  { %v1646_v34 = vpop.eup %1645 }
 0x53d   :  { %v407_v35 = vmul.f32 %v1646_v34, %v405_v33  ;;  %vm412_vm11 = vweird.f32 %v1646_v34 }
 0x53e   :  { %vm413_vm13 = vmor %vm411_vm12, %vm412_vm11 }
 0x53f   :  { %v408_v36 = vsub.f32 1.0, %v407_v35 }
 0x541   :  { %v409_v37 = vmul.f32 %v1646_v34, %v408_v36 }
 0x543   :  { %v410_v38 = vadd.f32 %v1646_v34, %v409_v37 }
 0x545   :  { %v414_v45 = vsel %vm413_vm13, %v1646_v34, %v410_v38 }
 0x546   :  { %v419_v48 = vsel %vm416_vm14, %v418_v46, %v414_v45 }
 0x547   :  { %v433_v53 = vsub.f32 1.0, %v419_v48  ;;  %v439_v57 = vmul.f32 %v419_v48, %v375_v25 }
 0x585   :  { %v424_v47 = vpop.permute.xlu2 %423 }
 0x586   :  { %v426_v49 = vmul.f32 %v424_v47, %v419_v48 }
 0x588   :  { %428 = vrot.lane.b32.xlu0 %v426_v49, %s1865_s29 }
 0x5fa   :  { %v429_v50 = vpop.permute.xlu0 %428 }
 0x5fb   :  { %v431_v51 = vadd.f32 %v429_v50, %v155_v29  ;;  %v161_v29 = vpop.f32.mrf.mxu0 }
 0x5fd   :  { %1647 = vtanh.f32 %v431_v51 }
 0x603   :  { %v1648_v52 = vpop.eup %1647 }
 0x604   :  { %435 = vrot.lane.b32.xlu1 %v1648_v52, %s1866_s30 }
 0x676   :  { %v436_v54 = vpop.permute.xlu1 %435 }
 0x677   :  { %v438_v58 = vmul.f32 %v436_v54, %v433_v53 }
 0x679   :  { %v440_v59 = vadd.f32 %v439_v57, %v438_v58 }
 0x67b   :  { %442 = vrot.lane.b32.xlu2 %v440_v59, %s1866_s30 }
 0x6d5   :  { %v443_v60 = vpop.permute.xlu2 %442 }
 0x6d6   :  { %1566 = vmatmul.msk.f32.vlgmr.msra.gmra.mxu3 %vm247_vm6, %v443_v60  ;;  %1578 = vmatmul.msk.f32.gmra.mxu0 %vm247_vm6, %v443_v60 }
 0x6d7   :  { %718 = vmatpush.msra.mxu3 %v1923_v3 }
 0x6d9   :  { %719 = vmatpush.msra.mxu3 %v1934_v6 }
 0x6db   :  { %720 = vmatpush.msra.mxu3 %v1947_v9 }
 0x6dd   :  { %721 = vmatpush.msra.mxu3 %v1954_v10 }
 0x759   :  { %v463_v61 = vpop.f32.mrf.mxu3 }
 0x75a   :  { %v486_v62 = vadd.f32 %v1975_v13, %v463_v61  ;;  %v466_v0 = vadd.f32 %v463_v61, %v158_v63 }
 0x75c   :  { %488 = vrot.lane.b32.xlu0 %v486_v62, %s1865_s29  ;;  %v1567_v1 = vmul.f32 -1.442695, %v466_v0 }
 0x75e   :  { %1649 = vpow2.f32 %v1567_v1 }
 0x764   :  { %v1650_v2 = vpop.eup %1649 }
 0x765   :  { %v470_v4 = vadd.f32 1.0, %v1650_v2 }
 0x767   :  { %1651 = vrcp.f32 %v470_v4  ;;  %v482_v9 = vand.u32 2147483648, %v470_v4  ;;  %vm476_vm1 = vweird.f32 %v470_v4  ;;  %v480_v10 = vand.u32 2147483647, %v470_v4 }
 0x769   :  { %v483_v14 = vor.u32 1.1754944e-38, %v482_v9  ;;  %vm481_vm3 = vcmp.eq.f32.partialorder %v480_v10, 8.507059e+37 }
 0x76d   :  { %v1652_v5 = vpop.eup %1651 }
 0x76e   :  { %v472_v3 = vmul.f32 %v1652_v5, %v470_v4  ;;  %vm477_vm15 = vweird.f32 %v1652_v5 }
 0x76f   :  { %vm478_vm2 = vmor %vm476_vm1, %vm477_vm15 }
 0x770   :  { %v473_v7 = vsub.f32 1.0, %v472_v3 }
 0x772   :  { %v474_v6 = vmul.f32 %v1652_v5, %v473_v7 }
 0x774   :  { %v475_v8 = vadd.f32 %v1652_v5, %v474_v6 }
 0x776   :  { %v479_v11 = vsel %vm478_vm2, %v1652_v5, %v475_v8 }
 0x777   :  { %v484_v16 = vsel %vm481_vm3, %v483_v14, %v479_v11 }
 0x778   :  { %v498_v21 = vsub.f32 1.0, %v484_v16  ;;  %v504_v23 = vmul.f32 %v484_v16, %v440_v59  ;;  %v164_v59 = vpop.f32.mrf.mxu0 }
 0x7ce   :  { %v489_v15 = vpop.permute.xlu0 %488 }
 0x7cf   :  { %v491_v17 = vmul.f32 %v489_v15, %v484_v16 }
 0x7d1   :  { %493 = vrot.lane.b32.xlu1 %v491_v17, %s1865_s29 }
 0x843   :  { %v494_v18 = vpop.permute.xlu1 %493 }
 0x844   :  { %v496_v19 = vadd.f32 %v494_v18, %v158_v63 }
 0x846   :  { %1653 = vtanh.f32 %v496_v19 }
 0x84c   :  { %v1654_v20 = vpop.eup %1653 }
 0x84d   :  { %500 = vrot.lane.b32.xlu2 %v1654_v20, %s1866_s30 }
 0x8a7   :  { %v501_v22 = vpop.permute.xlu2 %500 }
 0x8a8   :  { %v503_v24 = vmul.f32 %v501_v22, %v498_v21 }
 0x8aa   :  { %v505_v25 = vadd.f32 %v504_v23, %v503_v24 }
 0x8ac   :  { %507 = vrot.lane.b32.xlu0 %v505_v25, %s1866_s30 }
 0x91e   :  { %v508_v26 = vpop.permute.xlu0 %507 }
 0x91f   :  { %1568 = vmatmul.msk.f32.vlgmr.msrb.gmra.mxu2 %vm247_vm6, %v508_v26  ;;  %1579 = vmatmul.msk.f32.gmra.mxu0 %vm247_vm6, %v508_v26 }
 0x920   :  { %1612 = vmatpush.msrb.mxu2 %v2003_v41 }
 0x922   :  { %1613 = vmatpush.msrb.mxu2 %v2005_v42 }
 0x924   :  { %1614 = vmatpush.msrb.mxu2 %v2010_v43 }
 0x926   :  { %1615 = vmatpush.msrb.mxu2 %v2013_v44 }
 0x9a2   :  { %v528_v27 = vpop.f32.mrf.mxu2 }
 0x9a3   :  { %v551_v28 = vadd.f32 %v1975_v13, %v528_v27  ;;  %v531_v30 = vadd.f32 %v528_v27, %v161_v29 }
 0x9a5   :  { %553 = vrot.lane.b32.xlu1 %v551_v28, %s1865_s29  ;;  %v1569_v31 = vmul.f32 -1.442695, %v531_v30 }
 0x9a7   :  { %1655 = vpow2.f32 %v1569_v31 }
 0x9ad   :  { %v1656_v32 = vpop.eup %1655 }
 0x9ae   :  { %v535_v33 = vadd.f32 1.0, %v1656_v32 }
 0x9b0   :  { %1657 = vrcp.f32 %v535_v33  ;;  %v547_v43 = vand.u32 2147483648, %v535_v33  ;;  %vm541_vm5 = vweird.f32 %v535_v33  ;;  %v545_v44 = vand.u32 2147483647, %v535_v33 }
 0x9b2   :  { %v548_v38 = vor.u32 1.1754944e-38, %v547_v43  ;;  %vm546_vm8 = vcmp.eq.f32.partialorder %v545_v44, 8.507059e+37 }
 0x9b6   :  { %v1658_v34 = vpop.eup %1657 }
 0x9b7   :  { %v537_v41 = vmul.f32 %v1658_v34, %v535_v33  ;;  %vm542_vm4 = vweird.f32 %v1658_v34 }
 0x9b8   :  { %vm543_vm7 = vmor %vm541_vm5, %vm542_vm4 }
 0x9b9   :  { %v538_v35 = vsub.f32 1.0, %v537_v41 }
 0x9bb   :  { %v539_v42 = vmul.f32 %v1658_v34, %v538_v35 }
 0x9bd   :  { %v540_v36 = vadd.f32 %v1658_v34, %v539_v42 }
 0x9bf   :  { %v544_v37 = vsel %vm543_vm7, %v1658_v34, %v540_v36 }
 0x9c0   :  { %v549_v40 = vsel %vm546_vm8, %v548_v38, %v544_v37 }
 0x9c1   :  { %v563_v49 = vsub.f32 1.0, %v549_v40  ;;  %v569_v51 = vmul.f32 %v549_v40, %v505_v25  ;;  %v167_v25 = vpop.f32.mrf.mxu0 }
 0xa17   :  { %v554_v39 = vpop.permute.xlu1 %553 }
 0xa18   :  { %v556_v45 = vmul.f32 %v554_v39, %v549_v40 }
 0xa1a   :  { %558 = vrot.lane.b32.xlu2 %v556_v45, %s1865_s29  ;;  %v75_v45 = vld [vmem:[#allocation2 + $0xa0] sm:$0xff] }
 0xa74   :  { %v559_v46 = vpop.permute.xlu2 %558 }
 0xa75   :  { %v561_v47 = vadd.f32 %v559_v46, %v161_v29  ;;  %v74_v46 = vld [vmem:[#allocation2 + $0x98] sm:$0xff] }
 0xa77   :  { %1659 = vtanh.f32 %v561_v47  ;;  %v73_v47 = vld [vmem:[#allocation2 + $0x90] sm:$0xff] }
 0xa7d   :  { %v1660_v48 = vpop.eup %1659 }
 0xa7e   :  { %565 = vrot.lane.b32.xlu0 %v1660_v48, %s1866_s30  ;;  %v72_v48 = vld [vmem:[#allocation2 + $0x88] sm:$0xff] }
 0xaf0   :  { %v566_v50 = vpop.permute.xlu0 %565 }
 0xaf1   :  { %v568_v52 = vmul.f32 %v566_v50, %v563_v49  ;;  %v71_v49 = vld [vmem:[#allocation2 + $0x80] sm:$0xff]  ;;  %v70_v50 = vld [vmem:[#allocation2 + $0x78] sm:$0xff] }
 0xaf3   :  { %v570_v53 = vadd.f32 %v569_v51, %v568_v52  ;;  %v69_v51 = vld [vmem:[#allocation2 + $0x70] sm:$0xff]  ;;  %v68_v52 = vld [vmem:[#allocation2 + $0x68] sm:$0xff] }
 0xaf5   :  { %572 = vrot.lane.b32.xlu1 %v570_v53, %s1866_s30 }
 0xb67   :  { %v573_v54 = vpop.permute.xlu1 %572 }
 0xb68   :  { %1570 = vmatmul.msk.f32.vlgmr.msrb.gmra.mxu3 %vm247_vm6, %v573_v54 }
 0xb69   :  { %824 = vmatpush.msrb.mxu3 %v75_v45 }
 0xb6b   :  { %825 = vmatpush.msrb.mxu3 %v74_v46 }
 0xb6d   :  { %826 = vmatpush.msrb.mxu3 %v73_v47 }
 0xb6f   :  { %827 = vmatpush.msrb.mxu3 %v72_v48 }
 0xb71   :  { %828 = vmatpush.msrb.mxu3 %v71_v49 }
 0xb73   :  { %829 = vmatpush.msrb.mxu3 %v70_v50 }
 0xb75   :  { %830 = vmatpush.msrb.mxu3 %v69_v51 }
 0xb77   :  { %831 = vmatpush.msrb.mxu3 %v68_v52 }
 0xbeb   :  { %v593_v57 = vpop.f32.mrf.mxu3 }
 0xbec   :  { %v616_v58 = vadd.f32 %v1975_v13, %v593_v57  ;;  %v596_v60 = vadd.f32 %v593_v57, %v164_v59  ;;  %v65_v57 = vld [vmem:[#allocation2 + $0x50] sm:$0xff] }
 0xbee   :  { %618 = vrot.lane.b32.xlu2 %v616_v58, %s1865_s29  ;;  %v1571_v61 = vmul.f32 -1.442695, %v596_v60  ;;  %v64_v58 = vld [vmem:[#allocation2 + $0x48] sm:$0xff] }
 0xbf0   :  { %1661 = vpow2.f32 %v1571_v61 }
 0xbf6   :  { %v1662_v62 = vpop.eup %1661 }
 0xbf7   :  { %v600_v63 = vadd.f32 1.0, %v1662_v62 }
 0xbf9   :  { %1663 = vrcp.f32 %v600_v63  ;;  %v612_v3 = vand.u32 2147483648, %v600_v63  ;;  %vm606_vm10 = vweird.f32 %v600_v63  ;;  %v610_v7 = vand.u32 2147483647, %v600_v63 }
 0xbfb   :  { %v613_v8 = vor.u32 1.1754944e-38, %v612_v3  ;;  %vm611_vm12 = vcmp.eq.f32.partialorder %v610_v7, 8.507059e+37  ;;  %v2105_v3 = vld [vmem:[#allocation2 + $0x20] ss:$0 sm:$0xff] }
 0xbff   :  { %v1664_v0 = vpop.eup %1663 }
 0xc00   :  { %v602_v1 = vmul.f32 %v1664_v0, %v600_v63  ;;  %vm607_vm9 = vweird.f32 %v1664_v0 }
 0xc01   :  { %vm608_vm11 = vmor %vm606_vm10, %vm607_vm9 }
 0xc02   :  { %v603_v2 = vsub.f32 1.0, %v602_v1  ;;  %v62_v1 = vld [vmem:[#allocation2 + $0x38] sm:$0xff] }
 0xc04   :  { %v604_v4 = vmul.f32 %v1664_v0, %v603_v2  ;;  %v61_v2 = vld [vmem:[#allocation2 + $0x30] sm:$0xff] }
 0xc06   :  { %v605_v5 = vadd.f32 %v1664_v0, %v604_v4  ;;  %v60_v4 = vld [vmem:[#allocation2 + $0x28] sm:$0xff] }
 0xc08   :  { %v609_v6 = vsel %vm608_vm11, %v1664_v0, %v605_v5  ;;  %v63_v0 = vld [vmem:[#allocation2 + $0x40] sm:$0xff]  ;;  %v2103_v5 = vpop.f32.mrf.mxu0 }
 0xc09   :  { %v614_v10 = vsel %vm611_vm12, %v613_v8, %v609_v6 }
 0xc0a   :  { %v628_v17 = vsub.f32 1.0, %v614_v10  ;;  %v634_v19 = vmul.f32 %v614_v10, %v570_v53  ;;  %v67_v53 = vld [vmem:[#allocation2 + $0x60] sm:$0xff] }
 0xc0b   :  { %832 = vmatpush.msrb.mxu3 %v67_v53 }
 0xc10   :  { %v791_v7 = vpop.f32.mrf.mxu0 }
 0xc11   :  { %v792_v6 = vadd.f32 %v2105_v3, %v791_v7  ;;  %v173_v7 = vld [vmem:[%s2352_s1] sm:$0xff] }
 0xc12   :  { %1553 = vmatmul.msk.f32.vlgmr.msra.gmra.mxu1 %vm181_vm0, %v173_v7 }
 0xc48   :  { %v619_v9 = vpop.permute.xlu2 %618 }
 0xc49   :  { %v621_v11 = vmul.f32 %v619_v9, %v614_v10  ;;  %v794_v9 = vpop.f32.mrf.mxu0 }
 0xc4a   :  { %v795_v10 = vadd.f32 %v2105_v3, %v794_v9  ;;  %v2157_v9 = vld [vmem:[%s2353_s2 + $0x50] sm:$0xff] }
 0xc4b   :  { %623 = vrot.lane.b32.xlu0 %v621_v11, %s1865_s29 }
 0xcbd   :  { %v624_v14 = vpop.permute.xlu0 %623 }
 0xcbe   :  { %v626_v15 = vadd.f32 %v624_v14, %v164_v59  ;;  %v797_v14 = vpop.f32.mrf.mxu0 }
 0xcc0   :  { %1665 = vtanh.f32 %v626_v15  ;;  %v798_v15 = vadd.f32 %v2105_v3, %v797_v14  ;;  %v176_v14 = vld [vmem:[%s2352_s1 + $0x18] sm:$0xff] }
 0xcc6   :  { %v1666_v16 = vpop.eup %1665 }
 0xcc7   :  { %630 = vrot.lane.b32.xlu1 %v1666_v16, %s1866_s30 }
 0xd39   :  { %v631_v18 = vpop.permute.xlu1 %630 }
 0xd3a   :  { %v633_v20 = vmul.f32 %v631_v18, %v628_v17  ;;  %v800_v17 = vpop.f32.mrf.mxu0 }
 0xd3b   :  { %v801_v18 = vadd.f32 %v2105_v3, %v800_v17 }
 0xd3c   :  { %v2087_v21 = vadd.f32 %v634_v19, %v633_v20 }
 0xd3e   :  { %637 = vrot.lane.b32.xlu2 %v2087_v21, %s1866_s30 }
 0xd98   :  { %v638_v22 = vpop.permute.xlu2 %637 }
 0xd99   :  { %1572 = vmatmul.msk.f32.vlgmr.msra.gmra.mxu2 %vm247_vm6, %v638_v22 }
 0xda1   :  { %1580 = vmatmul.msk.f32.vlgmr.msrb.gmra.mxu2 %vm247_vm6, %v573_v54  ;;  %v66_v54 = vld [vmem:[#allocation2 + $0x58] sm:$0xff] }
 0xda2   :  { %833 = vmatpush.msrb.mxu3 %v66_v54 }
 0xda4   :  { %834 = vmatpush.msrb.mxu3 %v65_v57 }
 0xda6   :  { %835 = vmatpush.msrb.mxu3 %v64_v58 }
 0xda8   :  { %836 = vmatpush.msrb.mxu3 %v63_v0 }
 0xda9   :  { %1581 = vmatmul.msk.f32.gmra.mxu2 %vm247_vm6, %v638_v22 }
 0xdaa   :  { %837 = vmatpush.msrb.mxu3 %v62_v1 }
 0xdac   :  { %838 = vmatpush.msrb.mxu3 %v61_v2 }
 0xdae   :  { %839 = vmatpush.msrb.mxu3 %v60_v4 }
 0xe1c   :  { %v658_v23 = vpop.f32.mrf.mxu2 }
 0xe1d   :  { %v681_v24 = vadd.f32 %v1975_v13, %v658_v23  ;;  %v661_v26 = vadd.f32 %v658_v23, %v167_v25 }
 0xe1f   :  { %683 = vrot.lane.b32.xlu0 %v681_v24, %s1865_s29  ;;  %v1573_v27 = vmul.f32 -1.442695, %v661_v26 }
 0xe21   :  { %1667 = vpow2.f32 %v1573_v27 }
 0xe24   :  { %v803_v20 = vpop.f32.mrf.mxu2 }
 0xe27   :  { %v1668_v28 = vpop.eup %1667 }
 0xe28   :  { %v665_v29 = vadd.f32 1.0, %v1668_v28 }
 0xe2a   :  { %1669 = vrcp.f32 %v665_v29  ;;  %v677_v41 = vand.u32 2147483648, %v665_v29  ;;  %vm671_vm14 = vweird.f32 %v665_v29  ;;  %v675_v35 = vand.u32 2147483647, %v665_v29 }
 0xe2c   :  { %v678_v36 = vor.u32 1.1754944e-38, %v677_v41  ;;  %vm676_vm1 = vcmp.eq.f32.partialorder %v675_v35, 8.507059e+37  ;;  %v806_v23 = vpop.f32.mrf.mxu2 }
 0xe2d   :  { %v807_v24 = vadd.f32 %v2105_v3, %v806_v23 }
 0xe30   :  { %v1670_v30 = vpop.eup %1669 }
 0xe31   :  { %v667_v31 = vmul.f32 %v1670_v30, %v665_v29  ;;  %vm672_vm13 = vweird.f32 %v1670_v30 }
 0xe32   :  { %vm673_vm15 = vmor %vm671_vm14, %vm672_vm13 }
 0xe33   :  { %v668_v32 = vsub.f32 1.0, %v667_v31  ;;  %v2118_v31 = vld [vmem:[#allocation2 + $0xa8] ss:$0 sm:$0xff] }
 0xe35   :  { %v669_v33 = vmul.f32 %v1670_v30, %v668_v32 }
 0xe37   :  { %v670_v34 = vadd.f32 %v1670_v30, %v669_v33 }
 0xe39   :  { %v674_v42 = vsel %vm673_vm15, %v1670_v30, %v670_v34 }
 0xe3a   :  { %v679_v44 = vsel %vm676_vm1, %v678_v36, %v674_v42 }
 0xe3b   :  { %v693_v59 = vsub.f32 1.0, %v679_v44  ;;  %v699_v61 = vmul.f32 %v679_v44, %v2087_v21  ;;  %v804_v21 = vadd.f32 %v2105_v3, %v803_v20  ;;  %v177_v20 = vld [vmem:[%s2352_s1 + $0x20] sm:$0xff] }
 0xe91   :  { %v684_v43 = vpop.permute.xlu0 %683 }
 0xe92   :  { %v686_v37 = vmul.f32 %v684_v43, %v679_v44 }
 0xe94   :  { %688 = vrot.lane.b32.xlu1 %v686_v37, %s1865_s29 }
 0xf06   :  { %v689_v38 = vpop.permute.xlu1 %688 }
 0xf07   :  { %v691_v39 = vadd.f32 %v689_v38, %v167_v25 }
 0xf09   :  { %1671 = vtanh.f32 %v691_v39 }
 0xf0a   :  { %1673 = vtanh.f32 %v792_v6  ;;  %v2137_v6 = vld [vmem:[%s2353_s2 + $0x68] sm:$0xff] }
 0xf0b   :  { %1675 = vtanh.f32 %v795_v10  ;;  %950 = vmatpush.msra.mxu0 %v2137_v6  ;;  %885 = vmatpush.msrb.mxu1 %v2137_v6  ;;  %v174_v10 = vld [vmem:[%s2352_s1 + $0x8] sm:$0xff] }
 0xf0c   :  { %1677 = vtanh.f32 %v798_v15  ;;  %1554 = vmatmul.msk.f32.gmra.mxu1 %vm181_vm0, %v174_v10 }
 0xf0d   :  { %1679 = vtanh.f32 %v801_v18 }
 0xf0e   :  { %1681 = vtanh.f32 %v804_v21 }
 0xf0f   :  { %v1672_v40 = vpop.eup %1671  ;;  %1683 = vtanh.f32 %v807_v24 }
 0xf10   :  { %695 = vrot.lane.b32.xlu2 %v1672_v40, %s1866_s30  ;;  %v1674_v11 = vpop.eup %1673 }
 0xf11   :  { %v1676_v16 = vpop.eup %1675 }
 0xf12   :  { %v1678_v19 = vpop.eup %1677 }
 0xf13   :  { %v1680_v22 = vpop.eup %1679 }
 0xf14   :  { %v1682_v25 = vpop.eup %1681 }
 0xf15   :  { %v1684_v26 = vpop.eup %1683 }
 0xf6a   :  { %v696_v60 = vpop.permute.xlu2 %695 }
 0xf6b   :  { %v698_v62 = vmul.f32 %v696_v60, %v693_v59 }
 0xf6d   :  { %v2099_v63 = vadd.f32 %v699_v61, %v698_v62 }
 0xf6f   :  { %702 = vrot.lane.b32.xlu0 %v2099_v63, %s1866_s30 }
 0xfe1   :  { %v703_v8 = vpop.permute.xlu0 %702 }
 0xfe2   :  { %1574 = vmatmul.msk.f32.vlgmr.msra.gmra.mxu3 %vm247_vm6, %v703_v8  ;;  %1582 = vmatmul.msk.f32.gmra.mxu2 %vm247_vm6, %v703_v8  ;;  %v2143_v8 = vld [vmem:[%s2353_s2 + $0x60] sm:$0xff] }
 0xfe3   :  { %951 = vmatpush.msra.mxu0 %v2143_v8  ;;  %886 = vmatpush.msrb.mxu1 %v2143_v8 }
 0xfea   :  { %840 = vmatmul.f32.vlgmr.msrb.gmra.mxu3 %v1674_v11  ;;  %v175_v11 = vld [vmem:[%s2352_s1 + $0x10] sm:$0xff] }
 0xfeb   :  { %1555 = vmatmul.msk.f32.gmra.mxu1 %vm181_vm0, %v175_v11 }
 0xff2   :  { %843 = vmatmul.f32.gmra.mxu3 %v1676_v16 }
 0xff3   :  { %1556 = vmatmul.msk.f32.gmra.mxu1 %vm181_vm0, %v176_v14 }
 0xffa   :  { %846 = vmatmul.f32.gmra.mxu3 %v1678_v19 }
 0xffb   :  { %1557 = vmatmul.msk.f32.gmra.mxu1 %vm181_vm0, %v177_v20 }
0x1002   :  { %849 = vmatmul.f32.gmra.mxu3 %v1680_v22 }
0x100a   :  { %852 = vmatmul.f32.gmra.mxu3 %v1682_v25 }
0x1012   :  { %855 = vmatmul.f32.gmra.mxu3 %v1684_v26  ;;  %v2207_v26 = vld [vmem:[%s2353_s2 + $0x70] ss:$0 sm:$0xff] }
0x1065   :  { %v723_v27 = vpop.f32.mrf.mxu3  ;;  %v809_v28 = vpop.f32.mrf.mxu2 }
0x1066   :  { %v746_v29 = vadd.f32 %v1975_v13, %v723_v27  ;;  %v810_v30 = vadd.f32 %v2105_v3, %v809_v28  ;;  %v726_v40 = vadd.f32 %v723_v27, %v2103_v5 }
0x1068   :  { %1685 = vtanh.f32 %v810_v30  ;;  %748 = vrot.lane.b32.xlu1 %v746_v29, %s1865_s29  ;;  %v1575_v45 = vmul.f32 -1.442695, %v726_v40 }
0x106a   :  { %1687 = vpow2.f32 %v1575_v45 }
0x106d   :  { %v841_v32 = vpop.f32.mrf.mxu3 }
0x106e   :  { %v1686_v33 = vpop.eup %1685  ;;  %v842_v34 = vadd.f32 %v2118_v31, %v841_v32 }
0x106f   :  { %858 = vmatmul.f32.gmra.mxu3 %v1686_v33 }
0x1070   :  { %865 = vst [vmem:[#allocation5] sm:$0xff] %v842_v34  ;;  %v1688_v46 = vpop.eup %1687 }
0x1071   :  { %v730_v47 = vadd.f32 1.0, %v1688_v46 }
0x1073   :  { %1689 = vrcp.f32 %v730_v47  ;;  %v742_v53 = vand.u32 2147483648, %v730_v47  ;;  %vm736_vm3 = vweird.f32 %v730_v47  ;;  %v740_v54 = vand.u32 2147483647, %v730_v47 }
0x1075   :  { %v844_v41 = vpop.f32.mrf.mxu3  ;;  %v743_v58 = vor.u32 1.1754944e-38, %v742_v53  ;;  %vm741_vm5 = vcmp.eq.f32.partialorder %v740_v54, 8.507059e+37 }
0x1076   :  { %v845_v35 = vadd.f32 %v2118_v31, %v844_v41 }
0x1078   :  { %866 = vst [vmem:[#allocation5 + $0x8] sm:$0xff] %v845_v35 }
0x1079   :  { %v1690_v48 = vpop.eup %1689 }
0x107a   :  { %v732_v49 = vmul.f32 %v1690_v48, %v730_v47  ;;  %vm737_vm2 = vweird.f32 %v1690_v48 }
0x107b   :  { %vm738_vm4 = vmor %vm736_vm3, %vm737_vm2 }
0x107c   :  { %v733_v50 = vsub.f32 1.0, %v732_v49 }
0x107d   :  { %v847_v42 = vpop.f32.mrf.mxu3 }
0x107e   :  { %v848_v13 = vadd.f32 %v2118_v31, %v847_v42  ;;  %v734_v51 = vmul.f32 %v1690_v48, %v733_v50 }
0x1080   :  { %867 = vst [vmem:[#allocation5 + $0x10] sm:$0xff] %v848_v13  ;;  %v735_v52 = vadd.f32 %v1690_v48, %v734_v51 }
0x1082   :  { %v739_v57 = vsel %vm738_vm4, %v1690_v48, %v735_v52 }
0x1083   :  { %v744_v60 = vsel %vm741_vm5, %v743_v58, %v739_v57 }
0x1084   :  { %v758_v15 = vsub.f32 1.0, %v744_v60  ;;  %v764_v17 = vmul.f32 %v744_v60, %v2099_v63  ;;  %v223_v63 = vpop.f32.mrf.mxu1 }
0x1085   :  { %v850_v36 = vpop.f32.mrf.mxu3 }
0x1086   :  { %v851_v43 = vadd.f32 %v2118_v31, %v850_v36 }
0x1088   :  { %868 = vst [vmem:[#allocation5 + $0x18] sm:$0xff] %v851_v43 }
0x108c   :  { %v2196_v22 = vpop.f32.mrf.mxu1 }
0x108d   :  { %v853_v44 = vpop.f32.mrf.mxu3 }
0x108e   :  { %v854_v37 = vadd.f32 %v2118_v31, %v853_v44 }
0x1090   :  { %869 = vst [vmem:[#allocation5 + $0x20] sm:$0xff] %v854_v37 }
0x1094   :  { %v2198_v23 = vpop.f32.mrf.mxu1 }
0x1095   :  { %v856_v38 = vpop.f32.mrf.mxu3 }
0x1096   :  { %v857_v39 = vadd.f32 %v2118_v31, %v856_v38 }
0x1098   :  { %870 = vst [vmem:[#allocation5 + $0x28] sm:$0xff] %v857_v39 }
0x109c   :  { %v2200_v24 = vpop.f32.mrf.mxu1 }
0x10a4   :  { %v2202_v25 = vpop.f32.mrf.mxu1 }
0x10da   :  { %v749_v59 = vpop.permute.xlu1 %748 }
0x10db   :  { %v751_v61 = vmul.f32 %v749_v59, %v744_v60 }
0x10dd   :  { %753 = vrot.lane.b32.xlu2 %v751_v61, %s1865_s29 }
0x10f2   :  { %v859_v62 = vpop.f32.mrf.mxu3 }
0x10f3   :  { %v860_v0 = vadd.f32 %v2118_v31, %v859_v62 }
0x10f5   :  { %871 = vst [vmem:[#allocation5 + $0x30] sm:$0xff] %v860_v0 }
0x1137   :  { %v754_v1 = vpop.permute.xlu2 %753 }
0x1138   :  { %v756_v2 = vadd.f32 %v754_v1, %v2103_v5  ;;  %v2150_v5 = vld [vmem:[%s2353_s2 + $0x58] sm:$0xff] }
0x1139   :  { %952 = vmatpush.msra.mxu0 %v2150_v5  ;;  %887 = vmatpush.msrb.mxu1 %v2150_v5 }
0x113a   :  { %1691 = vtanh.f32 %v756_v2 }
0x113b   :  { %953 = vmatpush.msra.mxu0 %v2157_v9  ;;  %888 = vmatpush.msrb.mxu1 %v2157_v9 }
0x113d   :  { %1080 = vmatpush.msrb.mxu0 %v2137_v6  ;;  %1015 = vmatpush.msra.mxu1 %v2137_v6 }
0x113f   :  { %1081 = vmatpush.msrb.mxu0 %v2143_v8  ;;  %1016 = vmatpush.msra.mxu1 %v2143_v8 }
0x1140   :  { %v1692_v4 = vpop.eup %1691 }
0x1141   :  { %760 = vrot.lane.b32.xlu0 %v1692_v4, %s1866_s30  ;;  %1082 = vmatpush.msrb.mxu0 %v2150_v5 }
0x1142   :  { %1017 = vmatpush.msra.mxu1 %v2150_v5 }
0x1143   :  { %1083 = vmatpush.msrb.mxu0 %v2157_v9 }
0x1144   :  { %1018 = vmatpush.msra.mxu1 %v2157_v9 }
0x11b3   :  { %v761_v16 = vpop.permute.xlu0 %760 }
0x11b4   :  { %v763_v18 = vmul.f32 %v761_v16, %v758_v15 }
0x11b6   :  { %v765_v19 = vadd.f32 %v764_v17, %v763_v18 }
0x11b8   :  { %767 = vrot.lane.b32.xlu1 %v765_v19, %s1866_s30 }
0x122a   :  { %v768_v21 = vpop.permute.xlu1 %767 }
0x122b   :  { %770 = vst.msk [vmem:[#allocation8] sm:$0xff] %vm247_vm6, %v768_v21  ;;  %1583 = vmatmul.msk.f32.gmra.mxu2 %vm247_vm6, %v768_v21  ;;  %1584 = vmatmul.msk.f32.vlgmr.msrb.gmra.mxu1 %vm247_vm6, %v768_v21 }
0x122c   :  { %1145 = vmatpush.msrb.mxu1 %v2137_v6 }
0x122e   :  { %1146 = vmatpush.msrb.mxu1 %v2143_v8 }
0x1230   :  { %1147 = vmatpush.msrb.mxu1 %v2150_v5 }
0x1232   :  { %1148 = vmatpush.msrb.mxu1 %v2157_v9 }
0x12a8   :  { %v890_v27 = vpop.f32.mrf.mxu1 }
0x12a9   :  { %v913_v28 = vadd.f32 %v2207_v26, %v890_v27  ;;  %v893_v33 = vadd.f32 %v890_v27, %v223_v63 }
0x12ab   :  { %915 = vrot.lane.b32.xlu2 %v913_v28, %s1865_s29  ;;  %v1585_v34 = vmul.f32 -1.442695, %v893_v33 }
0x12ae   :  { %v812_v29 = vpop.f32.mrf.mxu2 }
0x12af   :  { %v813_v30 = vadd.f32 %v2105_v3, %v812_v29 }
0x12b1   :  { %1693 = vtanh.f32 %v813_v30 }
0x12b2   :  { %1695 = vpow2.f32 %v1585_v34 }
0x12b7   :  { %v1694_v32 = vpop.eup %1693 }
0x12b8   :  { %861 = vmatmul.f32.gmra.mxu3 %v1694_v32  ;;  %v1696_v41 = vpop.eup %1695 }
0x12b9   :  { %v897_v35 = vadd.f32 1.0, %v1696_v41 }
0x12bb   :  { %1697 = vrcp.f32 %v897_v35  ;;  %v909_v37 = vand.u32 2147483648, %v897_v35  ;;  %vm903_vm7 = vweird.f32 %v897_v35  ;;  %v907_v38 = vand.u32 2147483647, %v897_v35 }
0x12bd   :  { %v910_v39 = vor.u32 1.1754944e-38, %v909_v37  ;;  %vm908_vm9 = vcmp.eq.f32.partialorder %v907_v38, 8.507059e+37 }
0x12c1   :  { %v1698_v42 = vpop.eup %1697 }
0x12c2   :  { %v899_v13 = vmul.f32 %v1698_v42, %v897_v35  ;;  %vm904_vm0 = vweird.f32 %v1698_v42 }
0x12c3   :  { %vm905_vm8 = vmor %vm903_vm7, %vm904_vm0 }
0x12c4   :  { %v900_v36 = vsub.f32 1.0, %v899_v13 }
0x12c6   :  { %v901_v43 = vmul.f32 %v1698_v42, %v900_v36 }
0x12c8   :  { %v902_v44 = vadd.f32 %v1698_v42, %v901_v43 }
0x12ca   :  { %v906_v3 = vsel %vm905_vm8, %v1698_v42, %v902_v44 }
0x12cb   :  { %v911_v45 = vsel %vm908_vm9, %v910_v39, %v906_v3 }
0x12cc   :  { %v925_v52 = vsub.f32 1.0, %v911_v45  ;;  %v931_v54 = vmul.f32 %v911_v45, %v765_v19 }
0x1305   :  { %v916_v40 = vpop.permute.xlu2 %915 }
0x1306   :  { %v918_v46 = vmul.f32 %v916_v40, %v911_v45 }
0x1308   :  { %920 = vrot.lane.b32.xlu0 %v918_v46, %s1865_s29 }
0x133b   :  { %v862_v47 = vpop.f32.mrf.mxu3 }
0x133c   :  { %v863_v48 = vadd.f32 %v2118_v31, %v862_v47 }
0x133e   :  { %872 = vst [vmem:[#allocation5 + $0x38] sm:$0xff] %v863_v48 }
0x133f   :  { %1505 = dma.vmem_to_hbm [thread:$0]  %s1498_s23, 1024, %s1500_s21, [#allocation4], %s1862_s26, %s1862_s26, %s1863_s27  }
0x137a   :  { %v921_v49 = vpop.permute.xlu0 %920 }
0x137b   :  { %v923_v50 = vadd.f32 %v921_v49, %v223_v63 }
0x137d   :  { %1699 = vtanh.f32 %v923_v50 }
0x1383   :  { %v1700_v51 = vpop.eup %1699 }
0x1384   :  { %927 = vrot.lane.b32.xlu1 %v1700_v51, %s1866_s30 }
0x13f6   :  { %v928_v53 = vpop.permute.xlu1 %927 }
0x13f7   :  { %v930_v57 = vmul.f32 %v928_v53, %v925_v52 }
0x13f9   :  { %v932_v58 = vadd.f32 %v931_v54, %v930_v57 }
0x13fb   :  { %934 = vrot.lane.b32.xlu2 %v932_v58, %s1866_s30 }
0x1455   :  { %v2216_v59 = vpop.permute.xlu2 %934 }
0x1456   :  { %1586 = vmatmul.msk.f32.vlgmr.msra.gmra.mxu0 %vm247_vm6, %v2216_v59 }
0x1457   :  { %1210 = vmatpush.msra.mxu0 %v2137_v6 }
0x1459   :  { %1211 = vmatpush.msra.mxu0 %v2143_v8 }
0x145b   :  { %1212 = vmatpush.msra.mxu0 %v2150_v5 }
0x145d   :  { %1213 = vmatpush.msra.mxu0 %v2157_v9 }
0x14d3   :  { %v955_v31 = vpop.f32.mrf.mxu0 }
0x14d4   :  { %v978_v60 = vadd.f32 %v2207_v26, %v955_v31  ;;  %v958_v61 = vadd.f32 %v955_v31, %v2196_v22 }
0x14d6   :  { %980 = vrot.lane.b32.xlu0 %v978_v60, %s1865_s29  ;;  %v1587_v62 = vmul.f32 -1.442695, %v958_v61 }
0x14d8   :  { %1701 = vpow2.f32 %v1587_v62 }
0x14de   :  { %v1702_v0 = vpop.eup %1701 }
0x14df   :  { %v962_v1 = vadd.f32 1.0, %v1702_v0 }
0x14e1   :  { %1703 = vrcp.f32 %v962_v1  ;;  %v974_v14 = vand.u32 2147483648, %v962_v1  ;;  %vm968_vm11 = vweird.f32 %v962_v1  ;;  %v972_v15 = vand.u32 2147483647, %v962_v1 }
0x14e3   :  { %v975_v17 = vor.u32 1.1754944e-38, %v974_v14  ;;  %vm973_vm13 = vcmp.eq.f32.partialorder %v972_v15, 8.507059e+37 }
0x14e7   :  { %v1704_v2 = vpop.eup %1703 }
0x14e8   :  { %v964_v4 = vmul.f32 %v1704_v2, %v962_v1  ;;  %vm969_vm10 = vweird.f32 %v1704_v2 }
0x14e9   :  { %vm970_vm12 = vmor %vm968_vm11, %vm969_vm10 }
0x14ea   :  { %v965_v7 = vsub.f32 1.0, %v964_v4 }
0x14ec   :  { %v966_v10 = vmul.f32 %v1704_v2, %v965_v7 }
0x14ee   :  { %v967_v11 = vadd.f32 %v1704_v2, %v966_v10 }
0x14f0   :  { %v971_v16 = vsel %vm970_vm12, %v1704_v2, %v967_v11 }
0x14f1   :  { %v976_v19 = vsel %vm973_vm13, %v975_v17, %v971_v16 }
0x14f2   :  { %v990_v28 = vsub.f32 1.0, %v976_v19  ;;  %v996_v30 = vmul.f32 %v976_v19, %v932_v58 }
0x1548   :  { %v981_v18 = vpop.permute.xlu0 %980 }
0x1549   :  { %v983_v20 = vmul.f32 %v981_v18, %v976_v19 }
0x154b   :  { %985 = vrot.lane.b32.xlu1 %v983_v20, %s1865_s29 }
0x15bd   :  { %v986_v21 = vpop.permute.xlu1 %985 }
0x15be   :  { %v988_v63 = vadd.f32 %v986_v21, %v2196_v22 }
0x15c0   :  { %1705 = vtanh.f32 %v988_v63 }
0x15c6   :  { %v1706_v27 = vpop.eup %1705 }
0x15c7   :  { %992 = vrot.lane.b32.xlu2 %v1706_v27, %s1866_s30 }
0x1621   :  { %v993_v29 = vpop.permute.xlu2 %992 }
0x1622   :  { %v995_v32 = vmul.f32 %v993_v29, %v990_v28 }
0x1624   :  { %v997_v33 = vadd.f32 %v996_v30, %v995_v32 }
0x1626   :  { %999 = vrot.lane.b32.xlu0 %v997_v33, %s1866_s30 }
0x1698   :  { %v2231_v34 = vpop.permute.xlu0 %999 }
0x1699   :  { %1588 = vmatmul.msk.f32.vlgmr.msra.gmra.mxu1 %vm247_vm6, %v2231_v34 }
0x169a   :  { %1275 = vmatpush.msra.mxu1 %v2137_v6 }
0x169c   :  { %1276 = vmatpush.msra.mxu1 %v2143_v8 }
0x169e   :  { %1277 = vmatpush.msra.mxu1 %v2150_v5 }
0x16a0   :  { %1278 = vmatpush.msra.mxu1 %v2157_v9 }
0x1716   :  { %v1020_v22 = vpop.f32.mrf.mxu1 }
0x1717   :  { %v1043_v41 = vadd.f32 %v2207_v26, %v1020_v22  ;;  %v1023_v35 = vadd.f32 %v1020_v22, %v2198_v23 }
0x1719   :  { %1045 = vrot.lane.b32.xlu1 %v1043_v41, %s1865_s29  ;;  %v1589_v42 = vmul.f32 -1.442695, %v1023_v35 }
0x171b   :  { %1707 = vpow2.f32 %v1589_v42 }
0x1721   :  { %v1708_v13 = vpop.eup %1707 }
0x1722   :  { %v1027_v36 = vadd.f32 1.0, %v1708_v13 }
0x1724   :  { %1709 = vrcp.f32 %v1027_v36  ;;  %v1039_v39 = vand.u32 2147483648, %v1027_v36  ;;  %vm1033_vm15 = vweird.f32 %v1027_v36  ;;  %v1037_v40 = vand.u32 2147483647, %v1027_v36 }
0x1726   :  { %v1040_v46 = vor.u32 1.1754944e-38, %v1039_v39  ;;  %vm1038_vm2 = vcmp.eq.f32.partialorder %v1037_v40, 8.507059e+37 }
0x172a   :  { %v1710_v43 = vpop.eup %1709 }
0x172b   :  { %v1029_v44 = vmul.f32 %v1710_v43, %v1027_v36  ;;  %vm1034_vm14 = vweird.f32 %v1710_v43 }
0x172c   :  { %vm1035_vm1 = vmor %vm1033_vm15, %vm1034_vm14 }
0x172d   :  { %v1030_v37 = vsub.f32 1.0, %v1029_v44 }
0x172f   :  { %v1031_v38 = vmul.f32 %v1710_v43, %v1030_v37 }
0x1731   :  { %v1032_v3 = vadd.f32 %v1710_v43, %v1031_v38 }
0x1733   :  { %v1036_v45 = vsel %vm1035_vm1, %v1710_v43, %v1032_v3 }
0x1734   :  { %v1041_v48 = vsel %vm1038_vm2, %v1040_v46, %v1036_v45 }
0x1735   :  { %v1055_v53 = vsub.f32 1.0, %v1041_v48  ;;  %v1061_v57 = vmul.f32 %v1041_v48, %v997_v33 }
0x178b   :  { %v1046_v47 = vpop.permute.xlu1 %1045 }
0x178c   :  { %v1048_v49 = vmul.f32 %v1046_v47, %v1041_v48 }
0x178e   :  { %1050 = vrot.lane.b32.xlu2 %v1048_v49, %s1865_s29 }
0x17e8   :  { %v1051_v50 = vpop.permute.xlu2 %1050 }
0x17e9   :  { %v1053_v51 = vadd.f32 %v1051_v50, %v2198_v23 }
0x17eb   :  { %1711 = vtanh.f32 %v1053_v51 }
0x17f1   :  { %v1712_v52 = vpop.eup %1711 }
0x17f2   :  { %1057 = vrot.lane.b32.xlu0 %v1712_v52, %s1866_s30 }
0x1864   :  { %v1058_v54 = vpop.permute.xlu0 %1057 }
0x1865   :  { %v1060_v58 = vmul.f32 %v1058_v54, %v1055_v53 }
0x1867   :  { %v1062_v31 = vadd.f32 %v1061_v57, %v1060_v58 }
0x1869   :  { %1064 = vrot.lane.b32.xlu1 %v1062_v31, %s1866_s30 }
0x18db   :  { %v2246_v60 = vpop.permute.xlu1 %1064 }
0x18dc   :  { %1590 = vmatmul.msk.f32.vlgmr.msrb.gmra.mxu0 %vm247_vm6, %v2246_v60 }
0x18dd   :  { %1340 = vmatpush.msrb.mxu0 %v2137_v6 }
0x18df   :  { %1341 = vmatpush.msrb.mxu0 %v2143_v8 }
0x18e1   :  { %1342 = vmatpush.msrb.mxu0 %v2150_v5 }
0x18e3   :  { %1343 = vmatpush.msrb.mxu0 %v2157_v9 }
0x1959   :  { %v1085_v23 = vpop.f32.mrf.mxu0 }
0x195a   :  { %v1108_v61 = vadd.f32 %v2207_v26, %v1085_v23  ;;  %v1088_v62 = vadd.f32 %v1085_v23, %v2200_v24 }
0x195c   :  { %1110 = vrot.lane.b32.xlu2 %v1108_v61, %s1865_s29  ;;  %v1591_v0 = vmul.f32 -1.442695, %v1088_v62 }
0x195e   :  { %1713 = vpow2.f32 %v1591_v0 }
0x1964   :  { %v1714_v1 = vpop.eup %1713 }
0x1965   :  { %v1092_v2 = vadd.f32 1.0, %v1714_v1 }
0x1967   :  { %1715 = vrcp.f32 %v1092_v2  ;;  %v1104_v5 = vand.u32 2147483648, %v1092_v2  ;;  %vm1098_vm4 = vweird.f32 %v1092_v2  ;;  %v1102_v9 = vand.u32 2147483647, %v1092_v2 }
0x1969   :  { %v1105_v14 = vor.u32 1.1754944e-38, %v1104_v5  ;;  %vm1103_vm0 = vcmp.eq.f32.partialorder %v1102_v9, 8.507059e+37 }
0x196d   :  { %v1716_v4 = vpop.eup %1715 }
0x196e   :  { %v1094_v6 = vmul.f32 %v1716_v4, %v1092_v2  ;;  %vm1099_vm3 = vweird.f32 %v1716_v4 }
0x196f   :  { %vm1100_vm5 = vmor %vm1098_vm4, %vm1099_vm3 }
0x1970   :  { %v1095_v7 = vsub.f32 1.0, %v1094_v6 }
0x1972   :  { %v1096_v8 = vmul.f32 %v1716_v4, %v1095_v7 }
0x1974   :  { %v1097_v10 = vadd.f32 %v1716_v4, %v1096_v8 }
0x1976   :  { %v1101_v11 = vsel %vm1100_vm5, %v1716_v4, %v1097_v10 }
0x1977   :  { %v1106_v16 = vsel %vm1103_vm0, %v1105_v14, %v1101_v11 }
0x1978   :  { %v1120_v21 = vsub.f32 1.0, %v1106_v16  ;;  %v1126_v27 = vmul.f32 %v1106_v16, %v1062_v31 }
0x19b6   :  { %v1111_v15 = vpop.permute.xlu2 %1110 }
0x19b7   :  { %v1113_v17 = vmul.f32 %v1111_v15, %v1106_v16 }
0x19b9   :  { %1115 = vrot.lane.b32.xlu0 %v1113_v17, %s1865_s29 }
0x1a2b   :  { %v1116_v18 = vpop.permute.xlu0 %1115 }
0x1a2c   :  { %v1118_v19 = vadd.f32 %v1116_v18, %v2200_v24 }
0x1a2e   :  { %1717 = vtanh.f32 %v1118_v19 }
0x1a34   :  { %v1718_v20 = vpop.eup %1717 }
0x1a35   :  { %1122 = vrot.lane.b32.xlu1 %v1718_v20, %s1866_s30 }
0x1aa7   :  { %v1123_v63 = vpop.permute.xlu1 %1122 }
0x1aa8   :  { %v1125_v28 = vmul.f32 %v1123_v63, %v1120_v21 }
0x1aaa   :  { %v1127_v29 = vadd.f32 %v1126_v27, %v1125_v28  ;;  %v80_v27 = vld [vmem:[#allocation2 + $0xc8] sm:$0xff]  ;;  %v79_v28 = vld [vmem:[#allocation2 + $0xc0] sm:$0xff] }
0x1aac   :  { %1129 = vrot.lane.b32.xlu2 %v1127_v29, %s1866_s30 }
0x1b06   :  { %v2261_v30 = vpop.permute.xlu2 %1129 }
0x1b07   :  { %1592 = vmatmul.msk.f32.vlgmr.msrb.gmra.mxu1 %vm247_vm6, %v2261_v30 }
0x1b08   :  { %1406 = vmatpush.msrb.mxu1 %v80_v27 }
0x1b0a   :  { %1407 = vmatpush.msrb.mxu1 %v79_v28 }
0x1b84   :  { %v1150_v32 = vpop.f32.mrf.mxu1 }
0x1b85   :  { %v1173_v33 = vadd.f32 %v2207_v26, %v1150_v32  ;;  %v1153_v24 = vadd.f32 %v1150_v32, %v2202_v25  ;;  %v77_v32 = vld [vmem:[#allocation2 + $0xb0] sm:$0xff] }
0x1b87   :  { %1175 = vrot.lane.b32.xlu0 %v1173_v33, %s1865_s29  ;;  %v1593_v22 = vmul.f32 -1.442695, %v1153_v24  ;;  %v97_v33 = vld [vmem:[#allocation2 + $0x150] sm:$0xff]  ;;  %v96_v24 = vld [vmem:[#allocation2 + $0x148] sm:$0xff] }
0x1b88   :  { %1444 = vmatpush.msra.mxu2 %v97_v33 }
0x1b89   :  { %1719 = vpow2.f32 %v1593_v22  ;;  %v95_v22 = vld [vmem:[#allocation2 + $0x140] sm:$0xff] }
0x1b8a   :  { %1445 = vmatpush.msra.mxu2 %v96_v24 }
0x1b8c   :  { %1446 = vmatpush.msra.mxu2 %v95_v22 }
0x1b8f   :  { %v1720_v41 = vpop.eup %1719 }
0x1b90   :  { %v1157_v35 = vadd.f32 1.0, %v1720_v41  ;;  %v94_v41 = vld [vmem:[#allocation2 + $0x138] sm:$0xff] }
0x1b91   :  { %1447 = vmatpush.msra.mxu2 %v94_v41 }
0x1b92   :  { %1721 = vrcp.f32 %v1157_v35  ;;  %v1169_v37 = vand.u32 2147483648, %v1157_v35  ;;  %vm1163_vm8 = vweird.f32 %v1157_v35  ;;  %v1167_v38 = vand.u32 2147483647, %v1157_v35 }
0x1b94   :  { %v1170_v39 = vor.u32 1.1754944e-38, %v1169_v37  ;;  %vm1168_vm10 = vcmp.eq.f32.partialorder %v1167_v38, 8.507059e+37  ;;  %v84_v37 = vld [vmem:[#allocation2 + $0xe8] sm:$0xff]  ;;  %v82_v38 = vld [vmem:[#allocation2 + $0xd8] sm:$0xff] }
0x1b98   :  { %v1722_v42 = vpop.eup %1721 }
0x1b99   :  { %v1159_v13 = vmul.f32 %v1722_v42, %v1157_v35  ;;  %vm1164_vm7 = vweird.f32 %v1722_v42  ;;  %v93_v35 = vld [vmem:[#allocation2 + $0x130] sm:$0xff] }
0x1b9a   :  { %vm1165_vm9 = vmor %vm1163_vm8, %vm1164_vm7  ;;  %1448 = vmatpush.msra.mxu2 %v93_v35 }
0x1b9b   :  { %v1160_v36 = vsub.f32 1.0, %v1159_v13  ;;  %v91_v13 = vld [vmem:[#allocation2 + $0x120] sm:$0xff] }
0x1b9d   :  { %v1161_v43 = vmul.f32 %v1722_v42, %v1160_v36  ;;  %v88_v36 = vld [vmem:[#allocation2 + $0x108] sm:$0xff] }
0x1b9f   :  { %v1162_v44 = vadd.f32 %v1722_v42, %v1161_v43  ;;  %v86_v43 = vld [vmem:[#allocation2 + $0xf8] sm:$0xff] }
0x1ba1   :  { %v1166_v3 = vsel %vm1165_vm9, %v1722_v42, %v1162_v44  ;;  %v92_v42 = vld [vmem:[#allocation2 + $0x128] sm:$0xff]  ;;  %v85_v44 = vld [vmem:[#allocation2 + $0xf0] sm:$0xff] }
0x1ba2   :  { %v1171_v45 = vsel %vm1168_vm10, %v1170_v39, %v1166_v3  ;;  %1449 = vmatpush.msra.mxu2 %v92_v42 }
0x1ba3   :  { %v1185_v50 = vsub.f32 1.0, %v1171_v45  ;;  %v1191_v52 = vmul.f32 %v1171_v45, %v1127_v29  ;;  %v78_v29 = vld [vmem:[#allocation2 + $0xb8] sm:$0xff] }
0x1ba4   :  { %1408 = vmatpush.msrb.mxu1 %v78_v29  ;;  %1450 = vmatpush.msra.mxu2 %v91_v13 }
0x1ba6   :  { %1409 = vmatpush.msrb.mxu1 %v77_v32 }
0x1bf9   :  { %v1176_v40 = vpop.permute.xlu0 %1175 }
0x1bfa   :  { %v1178_v46 = vmul.f32 %v1176_v40, %v1171_v45  ;;  %v2300_v40 = vld [vmem:[#allocation2 + $0xd0] ss:$0 sm:$0xff] }
0x1bfc   :  { %1180 = vrot.lane.b32.xlu1 %v1178_v46, %s1865_s29 }
0x1c6e   :  { %v1181_v47 = vpop.permute.xlu1 %1180 }
0x1c6f   :  { %v1183_v48 = vadd.f32 %v1181_v47, %v2202_v25 }
0x1c71   :  { %1723 = vtanh.f32 %v1183_v48 }
0x1c77   :  { %v1724_v49 = vpop.eup %1723 }
0x1c78   :  { %1187 = vrot.lane.b32.xlu2 %v1724_v49, %s1866_s30 }
0x1cd2   :  { %v1188_v51 = vpop.permute.xlu2 %1187 }
0x1cd3   :  { %v1190_v53 = vmul.f32 %v1188_v51, %v1185_v50 }
0x1cd5   :  { %v1192_v54 = vadd.f32 %v1191_v52, %v1190_v53 }
0x1cd7   :  { %1194 = vrot.lane.b32.xlu0 %v1192_v54, %s1866_s30 }
0x1d49   :  { %v2272_v57 = vpop.permute.xlu0 %1194 }
0x1d4a   :  { %1594 = vmatmul.msk.f32.vlgmr.msra.gmra.mxu0 %vm247_vm6, %v2272_v57 }
0x1dc7   :  { %v1215_v58 = vpop.f32.mrf.mxu0 }
0x1dc8   :  { %v1238_v31 = vadd.f32 %v2207_v26, %v1215_v58  ;;  %v1218_v25 = vadd.f32 %v1215_v58, %v1970_v12 }
0x1dca   :  { %1240 = vrot.lane.b32.xlu1 %v1238_v31, %s1865_s29  ;;  %v1595_v23 = vmul.f32 -1.442695, %v1218_v25 }
0x1dcc   :  { %1725 = vpow2.f32 %v1595_v23 }
0x1dd2   :  { %v1726_v61 = vpop.eup %1725 }
0x1dd3   :  { %v1222_v62 = vadd.f32 1.0, %v1726_v61 }
0x1dd5   :  { %1727 = vrcp.f32 %v1222_v62  ;;  %v1234_v7 = vand.u32 2147483648, %v1222_v62  ;;  %vm1228_vm12 = vweird.f32 %v1222_v62  ;;  %v1232_v8 = vand.u32 2147483647, %v1222_v62 }
0x1dd7   :  { %v1235_v5 = vor.u32 1.1754944e-38, %v1234_v7  ;;  %vm1233_vm14 = vcmp.eq.f32.partialorder %v1232_v8, 8.507059e+37 }
0x1ddb   :  { %v1728_v0 = vpop.eup %1727 }
0x1ddc   :  { %v1224_v1 = vmul.f32 %v1728_v0, %v1222_v62  ;;  %vm1229_vm11 = vweird.f32 %v1728_v0 }
0x1ddd   :  { %vm1230_vm13 = vmor %vm1228_vm12, %vm1229_vm11 }
0x1dde   :  { %v1225_v2 = vsub.f32 1.0, %v1224_v1 }
0x1de0   :  { %v1226_v4 = vmul.f32 %v1728_v0, %v1225_v2 }
0x1de2   :  { %v1227_v6 = vadd.f32 %v1728_v0, %v1226_v4 }
0x1de4   :  { %v1231_v10 = vsel %vm1230_vm13, %v1728_v0, %v1227_v6 }
0x1de5   :  { %v1236_v11 = vsel %vm1233_vm14, %v1235_v5, %v1231_v10 }
0x1de6   :  { %v1250_v18 = vsub.f32 1.0, %v1236_v11  ;;  %v1256_v20 = vmul.f32 %v1236_v11, %v1192_v54 }
0x1e3c   :  { %v1241_v9 = vpop.permute.xlu1 %1240 }
0x1e3d   :  { %v1243_v14 = vmul.f32 %v1241_v9, %v1236_v11 }
0x1e3f   :  { %1245 = vrot.lane.b32.xlu2 %v1243_v14, %s1865_s29 }
0x1e99   :  { %v1246_v15 = vpop.permute.xlu2 %1245 }
0x1e9a   :  { %v1248_v16 = vadd.f32 %v1246_v15, %v1970_v12 }
0x1e9c   :  { %1729 = vtanh.f32 %v1248_v16 }
0x1ea2   :  { %v1730_v17 = vpop.eup %1729 }
0x1ea3   :  { %1252 = vrot.lane.b32.xlu0 %v1730_v17, %s1866_s30 }
0x1f15   :  { %v1253_v19 = vpop.permute.xlu0 %1252 }
0x1f16   :  { %v1255_v21 = vmul.f32 %v1253_v19, %v1250_v18 }
0x1f18   :  { %v2282_v63 = vadd.f32 %v1256_v20, %v1255_v21  ;;  %v2310_v20 = vld [vmem:[#allocation2 + $0x158] ss:$0 sm:$0xff] }
0x1f1a   :  { %1259 = vrot.lane.b32.xlu1 %v2282_v63, %s1866_s30 }
0x1f8c   :  { %v1260_v12 = vpop.permute.xlu1 %1259 }
0x1f8d   :  { %1596 = vmatmul.msk.f32.vlgmr.msra.gmra.mxu1 %vm247_vm6, %v1260_v12 }
0x1f95   :  { %1600 = vmatmul.msk.f32.vlgmr.msrb.gmra.mxu1 %vm247_vm6, %v2216_v59  ;;  %v90_v59 = vld [vmem:[#allocation2 + $0x118] sm:$0xff] }
0x1f96   :  { %1451 = vmatpush.msra.mxu2 %v90_v59 }
0x1f9d   :  { %1601 = vmatmul.msk.f32.gmra.mxu1 %vm247_vm6, %v2231_v34  ;;  %v89_v34 = vld [vmem:[#allocation2 + $0x110] sm:$0xff] }
0x1f9e   :  { %1452 = vmatpush.msra.mxu2 %v89_v34 }
0x1fa0   :  { %1453 = vmatpush.msra.mxu2 %v88_v36 }
0x1fa5   :  { %1602 = vmatmul.msk.f32.gmra.mxu1 %vm247_vm6, %v2246_v60  ;;  %v87_v60 = vld [vmem:[#allocation2 + $0x100] sm:$0xff] }
0x1fa6   :  { %1454 = vmatpush.msra.mxu2 %v87_v60 }
0x1fa8   :  { %1455 = vmatpush.msra.mxu2 %v86_v43 }
0x1faa   :  { %1456 = vmatpush.msra.mxu2 %v85_v44 }
0x1fac   :  { %1457 = vmatpush.msra.mxu2 %v84_v37 }
0x1fad   :  { %1603 = vmatmul.msk.f32.gmra.mxu1 %vm247_vm6, %v2261_v30  ;;  %v83_v30 = vld [vmem:[#allocation2 + $0xe0] sm:$0xff] }
0x1fae   :  { %1458 = vmatpush.msra.mxu2 %v83_v30 }
0x1fb0   :  { %1459 = vmatpush.msra.mxu2 %v82_v38 }
0x1fb5   :  { %1604 = vmatmul.msk.f32.gmra.mxu1 %vm247_vm6, %v2272_v57 }
0x1fbd   :  { %1605 = vmatmul.msk.f32.gmra.mxu1 %vm247_vm6, %v1260_v12 }
0x200a   :  { %v1280_v3 = vpop.f32.mrf.mxu1 }
0x200b   :  { %v1303_v39 = vadd.f32 %v2207_v26, %v1280_v3  ;;  %v1283_v23 = vadd.f32 %v1280_v3, %v2040_v55 }
0x200d   :  { %1305 = vrot.lane.b32.xlu2 %v1303_v39, %s1865_s29  ;;  %v1597_v61 = vmul.f32 -1.442695, %v1283_v23 }
0x2012   :  { %v1411_v45 = vpop.f32.mrf.mxu1 }
0x2013   :  { %v1412_v46 = vadd.f32 %v2300_v40, %v1411_v45 }
0x2015   :  { %1731 = vtanh.f32 %v1412_v46 }
0x201a   :  { %v1414_v47 = vpop.f32.mrf.mxu1 }
0x201b   :  { %v1732_v48 = vpop.eup %1731  ;;  %v1415_v49 = vadd.f32 %v2300_v40, %v1414_v47 }
0x201c   :  { %1460 = vmatmul.f32.vlgmr.msra.gmra.mxu2 %v1732_v48 }
0x201d   :  { %1733 = vtanh.f32 %v1415_v49 }
0x2022   :  { %v1417_v50 = vpop.f32.mrf.mxu1 }
0x2023   :  { %v1734_v51 = vpop.eup %1733  ;;  %v1418_v52 = vadd.f32 %v2300_v40, %v1417_v50 }
0x2024   :  { %1463 = vmatmul.f32.gmra.mxu2 %v1734_v51 }
0x2025   :  { %1735 = vtanh.f32 %v1418_v52 }
0x202a   :  { %v1420_v53 = vpop.f32.mrf.mxu1 }
0x202b   :  { %v1736_v54 = vpop.eup %1735  ;;  %v1421_v57 = vadd.f32 %v2300_v40, %v1420_v53 }
0x202c   :  { %1466 = vmatmul.f32.gmra.mxu2 %v1736_v54 }
0x202d   :  { %1737 = vtanh.f32 %v1421_v57 }
0x2032   :  { %v1423_v58 = vpop.f32.mrf.mxu1 }
0x2033   :  { %v1738_v31 = vpop.eup %1737  ;;  %v1424_v25 = vadd.f32 %v2300_v40, %v1423_v58 }
0x2034   :  { %1469 = vmatmul.f32.gmra.mxu2 %v1738_v31 }
0x2035   :  { %1739 = vtanh.f32 %v1424_v25 }
0x203a   :  { %v1426_v62 = vpop.f32.mrf.mxu1 }
0x203b   :  { %v1740_v0 = vpop.eup %1739  ;;  %v1427_v1 = vadd.f32 %v2300_v40, %v1426_v62 }
0x203c   :  { %1472 = vmatmul.f32.gmra.mxu2 %v1740_v0 }
0x203d   :  { %1741 = vtanh.f32 %v1427_v1 }
0x203e   :  { %1743 = vpow2.f32 %v1597_v61 }
0x2043   :  { %v1742_v2 = vpop.eup %1741 }
0x2044   :  { %v1744_v4 = vpop.eup %1743  ;;  %1475 = vmatmul.f32.gmra.mxu2 %v1742_v2 }
0x2045   :  { %v1287_v6 = vadd.f32 1.0, %v1744_v4 }
0x2047   :  { %1745 = vrcp.f32 %v1287_v6  ;;  %v1299_v11 = vand.u32 2147483648, %v1287_v6  ;;  %vm1293_vm1 = vweird.f32 %v1287_v6  ;;  %v1297_v14 = vand.u32 2147483647, %v1287_v6 }
0x2049   :  { %v1300_v16 = vor.u32 1.1754944e-38, %v1299_v11  ;;  %vm1298_vm3 = vcmp.eq.f32.partialorder %v1297_v14, 8.507059e+37 }
0x204d   :  { %v1746_v7 = vpop.eup %1745 }
0x204e   :  { %v1289_v8 = vmul.f32 %v1746_v7, %v1287_v6  ;;  %vm1294_vm15 = vweird.f32 %v1746_v7 }
0x204f   :  { %vm1295_vm2 = vmor %vm1293_vm1, %vm1294_vm15 }
0x2050   :  { %v1290_v10 = vsub.f32 1.0, %v1289_v8 }
0x2052   :  { %v1291_v5 = vmul.f32 %v1746_v7, %v1290_v10 }
0x2054   :  { %v1292_v9 = vadd.f32 %v1746_v7, %v1291_v5 }
0x2056   :  { %v1296_v15 = vsel %vm1295_vm2, %v1746_v7, %v1292_v9 }
0x2057   :  { %v1301_v18 = vsel %vm1298_vm3, %v1300_v16, %v1296_v15 }
0x2058   :  { %v1315_v36 = vsub.f32 1.0, %v1301_v18  ;;  %v1321_v43 = vmul.f32 %v1301_v18, %v2282_v63 }
0x2067   :  { %v1306_v17 = vpop.permute.xlu2 %1305 }
0x2068   :  { %v1308_v19 = vmul.f32 %v1306_v17, %v1301_v18 }
0x206a   :  { %1310 = vrot.lane.b32.xlu0 %v1308_v19, %s1865_s29 }
0x209f   :  { %v1461_v21 = vpop.f32.mrf.mxu2 }
0x20a0   :  { %v1462_v27 = vadd.f32 %v2310_v20, %v1461_v21 }
0x20a2   :  { %1485 = vst [vmem:[#allocation6] sm:$0xff] %v1462_v27 }
0x20a7   :  { %v1464_v28 = vpop.f32.mrf.mxu2 }
0x20a8   :  { %v1465_v29 = vadd.f32 %v2310_v20, %v1464_v28 }
0x20aa   :  { %1486 = vst [vmem:[#allocation6 + $0x8] sm:$0xff] %v1465_v29 }
0x20af   :  { %v1467_v32 = vpop.f32.mrf.mxu2 }
0x20b0   :  { %v1468_v12 = vadd.f32 %v2310_v20, %v1467_v32 }
0x20b2   :  { %1487 = vst [vmem:[#allocation6 + $0x10] sm:$0xff] %v1468_v12 }
0x20b7   :  { %v1470_v33 = vpop.f32.mrf.mxu2 }
0x20b8   :  { %v1471_v24 = vadd.f32 %v2310_v20, %v1470_v33 }
0x20ba   :  { %1488 = vst [vmem:[#allocation6 + $0x18] sm:$0xff] %v1471_v24 }
0x20bf   :  { %v1473_v22 = vpop.f32.mrf.mxu2 }
0x20c0   :  { %v1474_v41 = vadd.f32 %v2310_v20, %v1473_v22 }
0x20c2   :  { %1489 = vst [vmem:[#allocation6 + $0x20] sm:$0xff] %v1474_v41 }
0x20c7   :  { %v1476_v35 = vpop.f32.mrf.mxu2 }
0x20c8   :  { %v1477_v42 = vadd.f32 %v2310_v20, %v1476_v35 }
0x20ca   :  { %1490 = vst [vmem:[#allocation6 + $0x28] sm:$0xff] %v1477_v42 }
0x20dc   :  { %v1311_v13 = vpop.permute.xlu0 %1310 }
0x20dd   :  { %v1313_v59 = vadd.f32 %v1311_v13, %v2040_v55 }
0x20df   :  { %1747 = vtanh.f32 %v1313_v59 }
0x20e5   :  { %v1748_v34 = vpop.eup %1747 }
0x20e6   :  { %1317 = vrot.lane.b32.xlu1 %v1748_v34, %s1866_s30 }
0x2158   :  { %v1318_v60 = vpop.permute.xlu1 %1317 }
0x2159   :  { %v1320_v44 = vmul.f32 %v1318_v60, %v1315_v36 }
0x215b   :  { %v1322_v37 = vadd.f32 %v1321_v43, %v1320_v44 }
0x215d   :  { %1324 = vrot.lane.b32.xlu2 %v1322_v37, %s1866_s30 }
0x21b7   :  { %v1325_v30 = vpop.permute.xlu2 %1324 }
0x21b8   :  { %1598 = vmatmul.msk.f32.vlgmr.msrb.gmra.mxu0 %vm247_vm6, %v1325_v30  ;;  %1606 = vmatmul.msk.f32.gmra.mxu1 %vm247_vm6, %v1325_v30 }
0x2235   :  { %v1345_v38 = vpop.f32.mrf.mxu0  ;;  %v1429_v3 = vpop.f32.mrf.mxu1 }
0x2236   :  { %v1368_v55 = vadd.f32 %v2207_v26, %v1345_v38  ;;  %v1430_v39 = vadd.f32 %v2300_v40, %v1429_v3  ;;  %v1348_v63 = vadd.f32 %v1345_v38, %v2042_v56 }
0x2238   :  { %1749 = vtanh.f32 %v1430_v39  ;;  %1370 = vrot.lane.b32.xlu0 %v1368_v55, %s1865_s29  ;;  %v1599_v46 = vmul.f32 -1.442695, %v1348_v63 }
0x223a   :  { %1751 = vpow2.f32 %v1599_v46 }
0x223e   :  { %v1750_v45 = vpop.eup %1749 }
0x223f   :  { %1478 = vmatmul.f32.gmra.mxu2 %v1750_v45 }
0x2240   :  { %v1752_v47 = vpop.eup %1751 }
0x2241   :  { %v1352_v48 = vadd.f32 1.0, %v1752_v47 }
0x2243   :  { %1753 = vrcp.f32 %v1352_v48  ;;  %v1364_v26 = vand.u32 2147483648, %v1352_v48  ;;  %vm1358_vm5 = vweird.f32 %v1352_v48  ;;  %v1362_v54 = vand.u32 2147483647, %v1352_v48 }
0x2245   :  { %v1365_v58 = vor.u32 1.1754944e-38, %v1364_v26  ;;  %vm1363_vm7 = vcmp.eq.f32.partialorder %v1362_v54, 8.507059e+37 }
0x2249   :  { %v1754_v49 = vpop.eup %1753 }
0x224a   :  { %v1354_v50 = vmul.f32 %v1754_v49, %v1352_v48  ;;  %vm1359_vm4 = vweird.f32 %v1754_v49 }
0x224b   :  { %vm1360_vm0 = vmor %vm1358_vm5, %vm1359_vm4 }
0x224c   :  { %v1355_v51 = vsub.f32 1.0, %v1354_v50 }
0x224e   :  { %v1356_v52 = vmul.f32 %v1754_v49, %v1355_v51 }
0x2250   :  { %v1357_v53 = vadd.f32 %v1754_v49, %v1356_v52 }
0x2252   :  { %v1361_v57 = vsel %vm1360_vm0, %v1754_v49, %v1357_v53 }
0x2253   :  { %v1366_v25 = vsel %vm1363_vm7, %v1365_v58, %v1361_v57 }
0x2254   :  { %v1380_v4 = vsub.f32 1.0, %v1366_v25  ;;  %v1386_v7 = vmul.f32 %v1366_v25, %v1322_v37 }
0x22aa   :  { %v1371_v31 = vpop.permute.xlu0 %1370 }
0x22ab   :  { %v1373_v23 = vmul.f32 %v1371_v31, %v1366_v25 }
0x22ad   :  { %1375 = vrot.lane.b32.xlu1 %v1373_v23, %s1865_s29 }
0x22c2   :  { %v1479_v61 = vpop.f32.mrf.mxu2 }
0x22c3   :  { %v1480_v62 = vadd.f32 %v2310_v20, %v1479_v61 }
0x22c5   :  { %1491 = vst [vmem:[#allocation6 + $0x30] sm:$0xff] %v1480_v62 }
0x231f   :  { %v1376_v0 = vpop.permute.xlu1 %1375 }
0x2320   :  { %v1378_v1 = vadd.f32 %v1376_v0, %v2042_v56 }
0x2322   :  { %1755 = vtanh.f32 %v1378_v1 }
0x2328   :  { %v1756_v2 = vpop.eup %1755 }
0x2329   :  { %1382 = vrot.lane.b32.xlu2 %v1756_v2, %s1866_s30 }
0x2383   :  { %v1383_v6 = vpop.permute.xlu2 %1382 }
0x2384   :  { %v1385_v8 = vmul.f32 %v1383_v6, %v1380_v4 }
0x2386   :  { %v1387_v10 = vadd.f32 %v1386_v7, %v1385_v8 }
0x2388   :  { %1390 = vrot.lane.b32.xlu0 %v1387_v10, %s1866_s30  ;;  %s1868_s30 = smov [#allocation6]  }
0x2389   :  { %s1510_s0 = sshll.u32 %s1868_s30, 4  ;;  %s1511_s0 = int_to_ptr.vmem [resolvable:$true] %s1510_s0 }
0x23fa   :  { %v1391_v5 = vpop.permute.xlu0 %1390 }
0x23fb   :  { %1607 = vmatmul.msk.f32.gmra.mxu1 %vm247_vm6, %v1391_v5 }
0x2478   :  { %v1432_v9 = vpop.f32.mrf.mxu1 }
0x2479   :  { %v1433_v11 = vadd.f32 %v2300_v40, %v1432_v9 }
0x247b   :  { %1757 = vtanh.f32 %v1433_v11 }
0x2481   :  { %v1758_v14 = vpop.eup %1757 }
0x2482   :  { %1481 = vmatmul.f32.gmra.mxu2 %v1758_v14 }
0x2505   :  { %v1482_v56 = vpop.f32.mrf.mxu2 }
0x2506   :  { %v1483_v40 = vadd.f32 %v2310_v20, %v1482_v56 }
0x2508   :  { %1492 = vst [vmem:[#allocation6 + $0x38] sm:$0xff] %v1483_v40 }
0x2509   :  { %1518 = dma.vmem_to_hbm [thread:$0]  %s1511_s0, 1024, %s1513_s28, [#allocation7], %s1862_s26, %s1862_s26, %s1863_s27  }
0x250a   :  { %1529 = dma.vmem_to_hbm [thread:$0]  %s1525_s3, 128, %s1527_s4, [#allocation7]  }
0x250b   :  { %1857 = dma.done.wait [#allocation4], 1024  }
0x250c   :  { %1858 = vsyncadd [#allocation4], 4294966272 }
0x250d   :  { %1859 = dma.done.wait [#allocation7], 1152  }
0x250e   :  { %1860 = vsyncadd [#allocation7], 4294966144 }
0x250f   :  { %1542 = vsyncpa [#allocation3], 1 }
0x2510   :  { %1543 = vsyncpa [#allocation4], 1 }
0x2511   :  { %1544 = vsyncpa [#allocation7], 1 }

</bundles_post_ra>
